<compile_context>
chip_gen: v7x
topology: tpu7x:2x2x1
jax: 0.10.0
libtpu: 0.0.40
codegen_flags: <defaults>
</compile_context>

<pallas_src>
import functools

import jax
import jax.numpy as jnp
from jax.experimental import pallas as pl
from jax.experimental.pallas import tpu as pltpu


def _round_up(x, m):
    return ((x + m - 1) // m) * m


def _gaussian_smearing_kernel(dist_ref, offset_ref, out_ref, *, coeff):
    # dist_ref:   (1, tile_n)      VMEM block -- edge distances on the lane axis
    # offset_ref: (G_pad, 1)       VMEM block -- Gaussian centers on sublanes
    # out_ref:    (tile_n, G)      VMEM block -- output tile in final (N, G) layout
    d = dist_ref[...]                         # (1, tile_n)      f32
    off = offset_ref[...]                     # (G_pad, 1)       f32
    diff = d - off                            # (G_pad, tile_n)  lane-dense broadcast
    vals = jnp.exp(coeff * diff * diff)       # f32 math on VPU + EUP, all lanes useful
    # XLU transpose (idle slot on this kernel): (G_pad, tile_n) -> (tile_n, G_pad),
    # then drop the padded Gaussian rows before the store so HBM traffic is exactly
    # the true N*G output bytes.
    vals_t = jnp.transpose(vals)              # (tile_n, G_pad)
    out_ref[...] = vals_t[:, : out_ref.shape[-1]].astype(out_ref.dtype)


def gaussian_smearing(dist, offset, coeff, *, tile_n=8192, out_dtype=jnp.float32):
    """dist: (N,) float, offset: (G,) float -> (N, G) out_dtype.

    out[n, g] = exp(coeff * (dist[n] - offset[g])^2)
    """
    n = dist.shape[0]
    g = offset.shape[0]

    # Lane axis tiling: keep tile_n a multiple of 128, clamp down for small N so
    # tiny inputs don't allocate an 8K-lane block.
    tile_n = max(128, min(int(tile_n), _round_up(n, 128)))
    tile_n = _round_up(tile_n, 128)
    num_tiles = pl.cdiv(n, tile_n)
    n_pad = num_tiles * tile_n

    # Pad dist on the lane axis (cheap, N-sized) so every dist block is fully
    # in-bounds; padded lanes produce finite values and map to output rows >= N,
    # which Pallas masks off when writing the (unpadded) output array.
    dist_f32 = dist.astype(jnp.float32)
    if n_pad != n:
        dist_f32 = jnp.pad(dist_f32, (0, n_pad - n))
    dist_row = dist_f32.reshape(1, n_pad)              # (1, N_pad): N on lanes

    # Pad the Gaussian axis to 64 sublanes for the compute tile (full 8-sublane
    # tiles, transpose-friendly); padded rows are discarded in-kernel.
    g_pad = _round_up(g, 64)
    offset_f32 = offset.astype(jnp.float32)
    if g_pad != g:
        offset_f32 = jnp.pad(offset_f32, (0, g_pad - g))
    offset_col = offset_f32.reshape(g_pad, 1)          # (G_pad, 1): G on sublanes

    kernel = functools.partial(_gaussian_smearing_kernel, coeff=float(coeff))

    out_itemsize = jnp.dtype(out_dtype).itemsize
    cost = pl.CostEstimate(
        flops=3 * n * g,                 # sub + mul + mul per element
        transcendentals=n * g,           # one exp per element
        bytes_accessed=n * g * out_itemsize + n * 4 + g * 4,
    )

    out = pl.pallas_call(
        kernel,
        # Unpadded output: Pallas masks the partial last row-block, so no
        # wrapper-side slice/copy is needed.
        out_shape=jax.ShapeDtypeStruct((n, g), out_dtype),
        grid_spec=pltpu.PrefetchScalarGridSpec(
            num_scalar_prefetch=0,
            grid=(num_tiles,),
            in_specs=[
                # (1, tile_n) lane-dense row of distances, stepping along N.
                pl.BlockSpec((1, tile_n), lambda i: (0, i)),
                # (G_pad, 1) column of Gaussian centers, resident across steps.
                pl.BlockSpec((g_pad, 1), lambda i: (0, 0)),
            ],
            # (tile_n, G) block straight into the final (N, G) layout.
            out_specs=pl.BlockSpec((tile_n, g), lambda i: (i, 0)),
        ),
        compiler_params=pltpu.CompilerParams(
            # "parallel" lets v7x shard grid steps across both TensorCores;
            # near-neutral on single-TC v5e/v6e.  If a v7x profile shows one
            # TC idle, switch to an explicit 2-way split with CORE_PARALLEL.
            dimension_semantics=("parallel",),
        ),
        cost_estimate=cost,
    )(dist_row, offset_col)

    return out


def gaussian_smearing_reference(dist, offset, coeff):
    d = dist.reshape(-1, 1) - offset.reshape(1, -1)
    return jnp.exp(coeff * d * d)


if __name__ == "__main__":
    # Module parameters (deterministic, as in __init__): linspace(0, 5, 50).
    start, stop, num_gaussians = 0.0, 5.0, 50
    offset = jnp.linspace(start, stop, num_gaussians, dtype=jnp.float32)
    # Matches the PyTorch init (.item() of the f32 spacing); offset is a
    # concrete module constant here, so the host read is harmless.
    coeff = -0.5 / float(offset[1] - offset[0]) ** 2

    # Example input: 1000 edge distances (not a tile multiple -> exercises the
    # padded/masked last block) in [0, 5).
    key = jax.random.PRNGKey(0)
    n_edges = 1000
    dist = jax.random.uniform(
        key, (n_edges,), dtype=jnp.float32, minval=0.0, maxval=5.0
    )

    out = gaussian_smearing(dist, offset, coeff)
    out = jax.block_until_ready(out)

    ref = gaussian_smearing_reference(dist, offset, coeff)
    assert out.shape == (n_edges, num_gaussians)
    assert jnp.allclose(out, ref, atol=1e-6, rtol=1e-6)

    print("KERNEL_OK")
</pallas_src>

<mosaic_0001>
module attributes {stable_mosaic.version = 11 : i64} {
  func.func @_gaussian_smearing_kernel(%arg0: i32, %arg1: memref<1x1024xf32, #tpu.memory_space<vmem>>, %arg2: memref<64x1xf32, #tpu.memory_space<vmem>>, %arg3: memref<1024x50xf32, #tpu.memory_space<vmem>>) attributes {dimension_semantics = [#tpu.dimension_semantics<parallel>], iteration_bounds = array<i64: 1>, scalar_prefetch = 0 : i64, scratch_operands = 0 : i64, tpu.core_type = #tpu.core_type<tc>, window_params = [{transform_indices = @transform_0, window_bounds = array<i64: 1, 1024>}, {pipeline_mode = #tpu.pipeline_mode<synchronous>, transform_indices = @transform_1, window_bounds = array<i64: 64, 1>}, {transform_indices = @transform_2, window_bounds = array<i64: 1024, 50>}]} {
    %c0 = arith.constant 0 : index
    %c0_0 = arith.constant 0 : index
    %0 = vector.load %arg1[%c0, %c0_0] : memref<1x1024xf32, #tpu.memory_space<vmem>>, vector<1x1024xf32>
    %c0_1 = arith.constant 0 : index
    %c0_2 = arith.constant 0 : index
    %1 = vector.load %arg2[%c0_1, %c0_2] : memref<64x1xf32, #tpu.memory_space<vmem>>, vector<64x1xf32>
    %2 = vector.broadcast %0 : vector<1x1024xf32> to vector<64x1024xf32>
    %3 = vector.broadcast %1 : vector<64x1xf32> to vector<64x1024xf32>
    %4 = arith.subf %2, %3 : vector<64x1024xf32>
    %cst = arith.constant -48.0200043 : f32
    %5 = vector.broadcast %cst : f32 to vector<64x1024xf32>
    %6 = arith.mulf %5, %4 : vector<64x1024xf32>
    %7 = arith.mulf %6, %4 : vector<64x1024xf32>
    %8 = math.exp %7 : vector<64x1024xf32>
    %9 = tpu.transpose %8, [1, 0] : vector<64x1024xf32> -> vector<1024x64xf32>
    %10 = vector.extract_strided_slice %9 {offsets = [0, 0], sizes = [1024, 50], strides = [1, 1]} : vector<1024x64xf32> to vector<1024x50xf32>
    %c0_3 = arith.constant 0 : index
    %c0_4 = arith.constant 0 : index
    %11 = vector.load %arg3[%c0_3, %c0_4] : memref<1024x50xf32, #tpu.memory_space<vmem>>, vector<1024x50xf32>
    tpu.vector_store %arg3[%c0_3, %c0_4], %10 {strides = array<i32>} : memref<1024x50xf32, #tpu.memory_space<vmem>>, vector<1024x50xf32>,
    return
  }
  func.func @transform_0(%arg0: i32) -> (i32, i32) {
    %c0_i32 = arith.constant 0 : i32
    %c0_i32_0 = arith.constant 0 : i32
    return %c0_i32, %arg0 : i32, i32
  }
  func.func @transform_1(%arg0: i32) -> (i32, i32) {
    %c0_i32 = arith.constant 0 : i32
    %c0_i32_0 = arith.constant 0 : i32
    %c0_i32_1 = arith.constant 0 : i32
    return %c0_i32, %c0_i32_0 : i32, i32
  }
  func.func @transform_2(%arg0: i32) -> (i32, i32) {
    %c0_i32 = arith.constant 0 : i32
    %c0_i32_0 = arith.constant 0 : i32
    return %arg0, %c0_i32 : i32, i32
  }
}

</mosaic_0001>

<bundles_post_ra>
// kernel: tpu_custom_call.1
= control target key start
LH: loop header
LB: loop body
LE: loop exit
PB: predicated region body
PF: predicated region fallthrough
CT: control target
= control target key end

     0   :  { %v21_v2 = vlaneseq  ;;  %v1474_v3 = vmov 0   ;;  %vm677_vm0 = vcmask 408576   ;;  %s2233_s0 = inlined_call_operand.vmem [shape: f32[1,1024], index: 0, kind: input, shape index: {}]   ;;  %s2234_s1 = inlined_call_operand.vmem [shape: f32[64,1], index: 1, kind: input, shape index: {}]   ;;  %s2235_s2 = inlined_call_operand.vmem [shape: f32[1000,50], index: 2, kind: output, shape index: {}]  }
   0x1   :  { %v14_v0 = vld [vmem:[%s2234_s1 + $0x10] sm:$0xff]  ;;  %v12_v1 = vld [vmem:[%s2234_s1] sm:$0xff]  ;;  %1345 = vset.pattern.permute.xlu1 %v1474_v3  ;;  %1344 = vset.pattern.permute.xlu0 %v1474_v3  ;;  %v15_v5 = vld [vmem:[%s2234_s1 + $0x18] sm:$0xff] }
   0x2   :  { %73 = vperm.xlu1 %1345, %v14_v0   ;;  %63 = vperm.xlu0 %1344, %v12_v1   ;;  %v22_v4 = vshrl.u32 %v21_v2, 7  ;;  %v13_v6 = vld [vmem:[%s2234_s1 + $0x8] sm:$0xff]  ;;  %v11_v7 = vld [vmem:[%s2233_s0] sm:$0xff]  ;;  %v19_v22 = vld [vmem:[%s2234_s1 + $0x38] sm:$0xff] }
   0x3   :  { %v17_v15 = vld [vmem:[%s2234_s1 + $0x28] sm:$0xff]  ;;  %v16_v16 = vld [vmem:[%s2234_s1 + $0x20] sm:$0xff]  ;;  %v18_v23 = vld [vmem:[%s2234_s1 + $0x30] sm:$0xff] }
   0x4   :  { %v31_v8 = vsub.s32 2, %v22_v4  ;;  %v35_v9 = vsub.s32 3, %v22_v4  ;;  %v39_v10 = vsub.s32 4, %v22_v4  ;;  %v43_v11 = vsub.s32 5, %v22_v4 }
   0x5   :  { %v47_v12 = vsub.s32 6, %v22_v4  ;;  %v51_v13 = vsub.s32 7, %v22_v4  ;;  %v23_v24 = vsub.s32 0, %v22_v4  ;;  %v27_v25 = vsub.s32 1, %v22_v4 }
   0x6   :  { %78 = vperm.xlu1 %1345, %v15_v5   ;;  %68 = vperm.xlu0 %1344, %v13_v6   ;;  %v1505_v14 = vrot.slane %v11_v7, %v31_v8  ;;  %v1513_v17 = vrot.slane %v11_v7, %v35_v9  ;;  %v1515_v18 = vrot.slane %v11_v7, %v39_v10 }
   0x7   :  { %v1517_v19 = vrot.slane %v11_v7, %v43_v11  ;;  %v1519_v20 = vrot.slane %v11_v7, %v47_v12  ;;  %v1521_v21 = vrot.slane %v11_v7, %v51_v13  ;;  %v1547_v33 = vrot.slane %v11_v7, %v23_v24 }
   0x8   :  { %v1549_v34 = vrot.slane %v11_v7, %v27_v25 }
   0xa   :  { %88 = vperm.xlu1 %1345, %v17_v15   ;;  %83 = vperm.xlu0 %1344, %v16_v16  }
   0xe   :  { %98 = vperm.xlu1 %1345, %v19_v22   ;;  %93 = vperm.xlu0 %1344, %v18_v23  }
  0x81   :  { %v74_v26 = vpop.permute.xlu1 %73  ;;  %v64_v35 = vpop.permute.xlu0 %63 }
  0x82   :  { %v1530_v27 = vsub.f32 %v1505_v14, %v74_v26  ;;  %v1533_v28 = vsub.f32 %v1513_v17, %v74_v26  ;;  %v1536_v29 = vsub.f32 %v1515_v18, %v74_v26  ;;  %v1539_v30 = vsub.f32 %v1517_v19, %v74_v26 }
  0x83   :  { %v1542_v31 = vsub.f32 %v1519_v20, %v74_v26  ;;  %v1545_v32 = vsub.f32 %v1521_v21, %v74_v26  ;;  %v101_v36 = vsub.f32 %v1547_v33, %v64_v35  ;;  %v102_v37 = vsub.f32 %v1549_v34, %v64_v35 }
  0x84   :  { %v1554_v38 = vsub.f32 %v1505_v14, %v64_v35  ;;  %v1557_v39 = vsub.f32 %v1513_v17, %v64_v35  ;;  %v1560_v40 = vsub.f32 %v1515_v18, %v64_v35  ;;  %v1563_v41 = vsub.f32 %v1517_v19, %v64_v35 }
  0x85   :  { %v1566_v42 = vsub.f32 %v1519_v20, %v64_v35  ;;  %v1569_v43 = vsub.f32 %v1521_v21, %v64_v35  ;;  %v165_v44 = vmul.f32 -48.020004, %v101_v36  ;;  %v166_v45 = vmul.f32 -48.020004, %v102_v37  ;;  %v79_v50 = vpop.permute.xlu1 %78  ;;  %v69_v57 = vpop.permute.xlu0 %68 }
  0x86   :  { %v1572_v51 = vsub.f32 %v1505_v14, %v79_v50  ;;  %v1575_v52 = vsub.f32 %v1513_v17, %v79_v50  ;;  %v1578_v53 = vsub.f32 %v1515_v18, %v79_v50  ;;  %v1581_v54 = vsub.f32 %v1517_v19, %v79_v50 }
  0x87   :  { %v229_v46 = vmul.f32 %v165_v44, %v101_v36  ;;  %v230_v47 = vmul.f32 %v166_v45, %v102_v37  ;;  %v1584_v55 = vsub.f32 %v1519_v20, %v79_v50  ;;  %v1587_v56 = vsub.f32 %v1521_v21, %v79_v50 }
  0x88   :  { %v117_v58 = vsub.f32 %v1547_v33, %v74_v26  ;;  %v109_v59 = vsub.f32 %v1547_v33, %v69_v57  ;;  %v118_v60 = vsub.f32 %v1549_v34, %v74_v26  ;;  %v110_v61 = vsub.f32 %v1549_v34, %v69_v57 }
  0x89   :  { %v293_v48 = vmul.f32 1.442695, %v229_v46  ;;  %v295_v49 = vmul.f32 1.442695, %v230_v47  ;;  %v1594_v63 = vsub.f32 %v1505_v14, %v69_v57  ;;  %v1597_v2 = vsub.f32 %v1513_v17, %v69_v57  ;;  %v1613_v46 = vpop.permute.xlu1 %88  ;;  %v1615_v47 = vpop.permute.xlu0 %83 }
  0x8a   :  { %v181_v1 = vmul.f32 -48.020004, %v117_v58  ;;  %v1600_v3 = vsub.f32 %v1515_v18, %v69_v57  ;;  %v1603_v4 = vsub.f32 %v1517_v19, %v69_v57  ;;  %v125_v5 = vsub.f32 %v1547_v33, %v79_v50 }
  0x8b   :  { %1346 = vpow2.f32 %v293_v48  ;;  %v1607_v6 = vsub.f32 %v1519_v20, %v69_v57  ;;  %v1610_v7 = vsub.f32 %v1521_v21, %v69_v57  ;;  %v173_v8 = vmul.f32 -48.020004, %v109_v59 }
  0x8c   :  { %1348 = vpow2.f32 %v295_v49  ;;  %v182_v9 = vmul.f32 -48.020004, %v118_v60  ;;  %v126_v10 = vsub.f32 %v1549_v34, %v79_v50  ;;  %v174_v11 = vmul.f32 -48.020004, %v110_v61 }
  0x8d   :  { %v237_v12 = vmul.f32 %v173_v8, %v109_v59  ;;  %v245_v15 = vmul.f32 %v181_v1, %v117_v58  ;;  %v189_v16 = vmul.f32 -48.020004, %v125_v5  ;;  %v141_v48 = vsub.f32 %v1547_v33, %v1613_v46 }
  0x8e   :  { %v238_v13 = vmul.f32 %v174_v11, %v110_v61  ;;  %v246_v22 = vmul.f32 %v182_v9, %v118_v60  ;;  %v190_v23 = vmul.f32 -48.020004, %v126_v10  ;;  %v133_v49 = vsub.f32 %v1547_v33, %v1615_v47 }
  0x8f   :  { %v309_v24 = vmul.f32 1.442695, %v237_v12  ;;  %v325_v26 = vmul.f32 1.442695, %v245_v15  ;;  %v253_v35 = vmul.f32 %v189_v16, %v125_v5  ;;  %v142_v50 = vsub.f32 %v1549_v34, %v1613_v46 }
  0x90   :  { %v311_v25 = vmul.f32 1.442695, %v238_v13  ;;  %v327_v36 = vmul.f32 1.442695, %v246_v22  ;;  %v254_v37 = vmul.f32 %v190_v23, %v126_v10  ;;  %v134_v57 = vsub.f32 %v1549_v34, %v1615_v47 }
  0x91   :  { %1350 = vpow2.f32 %v309_v24  ;;  %v341_v44 = vmul.f32 1.442695, %v253_v35  ;;  %v205_v60 = vmul.f32 -48.020004, %v141_v48  ;;  %v197_v61 = vmul.f32 -48.020004, %v133_v49  ;;  %v1625_v24 = vpop.permute.xlu1 %98 }
  0x92   :  { %1352 = vpow2.f32 %v311_v25  ;;  %v343_v45 = vmul.f32 1.442695, %v254_v37  ;;  %v1627_v25 = vpop.permute.xlu0 %93 }
  0x93   :  { %1354 = vpow2.f32 %v325_v26  ;;  %v261_v8 = vmul.f32 %v197_v61, %v133_v49  ;;  %v269_v10 = vmul.f32 %v205_v60, %v141_v48  ;;  %v157_v26 = vsub.f32 %v1547_v33, %v1625_v24 }
  0x94   :  { %1356 = vpow2.f32 %v327_v36  ;;  %v149_v35 = vsub.f32 %v1547_v33, %v1627_v25  ;;  %v158_v36 = vsub.f32 %v1549_v34, %v1625_v24  ;;  %v150_v37 = vsub.f32 %v1549_v34, %v1627_v25 }
  0x95   :  { %v1347_v62 = vpop.eup %1346  ;;  %1358 = vpow2.f32 %v341_v44  ;;  %v357_v13 = vmul.f32 1.442695, %v261_v8  ;;  %v373_v22 = vmul.f32 1.442695, %v269_v10  ;;  %v221_v48 = vmul.f32 -48.020004, %v157_v26 }
  0x96   :  { %v1349_v0 = vpop.eup %1348  ;;  %421 = vxpose.xlu0.b32.start [1/8] (short) %v1347_v62, 128  ;;  %1360 = vpow2.f32 %v343_v45  ;;  %v206_v62 = vmul.f32 -48.020004, %v142_v50  ;;  %v213_v49 = vmul.f32 -48.020004, %v149_v35 }
  0x97   :  { %453 = vxpose.xlu1.b32.start [1/8] (short) %v1349_v0, 128  ;;  %v198_v0 = vmul.f32 -48.020004, %v134_v57  ;;  %1362 = vpow2.f32 %v357_v13  ;;  %v285_v33 = vmul.f32 %v221_v48, %v157_v26  ;;  %v168_v13 = vmul.f32 -48.020004, %v1557_v39 }
  0x98   :  { %v270_v11 = vmul.f32 %v206_v62, %v142_v50  ;;  %v222_v50 = vmul.f32 -48.020004, %v158_v36  ;;  %v277_v60 = vmul.f32 %v213_v49, %v149_v35  ;;  %v183_v26 = vmul.f32 -48.020004, %v1530_v27 }
  0x99   :  { %v262_v9 = vmul.f32 %v198_v0, %v134_v57  ;;  %v214_v57 = vmul.f32 -48.020004, %v150_v37  ;;  %v191_v48 = vmul.f32 -48.020004, %v1572_v51 }
  0x9a   :  { %v375_v23 = vmul.f32 1.442695, %v270_v11  ;;  %v286_v62 = vmul.f32 %v222_v50, %v158_v36  ;;  %v389_v0 = vmul.f32 1.442695, %v277_v60  ;;  %v247_v49 = vmul.f32 %v183_v26, %v1530_v27 }
  0x9b   :  { %v1351_v58 = vpop.eup %1350  ;;  %v359_v15 = vmul.f32 1.442695, %v262_v9  ;;  %v278_v61 = vmul.f32 %v214_v57, %v150_v37  ;;  %v184_v37 = vmul.f32 -48.020004, %v1533_v28  ;;  %v135_v50 = vsub.f32 %v1505_v14, %v1615_v47 }
  0x9c   :  { %v1353_v59 = vpop.eup %1352  ;;  %422 = vxpose.xlu0.b32.cont [2/8] (short) %v1351_v58, 128  ;;  %v407_v34 = vmul.f32 1.442695, %v286_v62  ;;  %v329_v60 = vmul.f32 1.442695, %v247_v49  ;;  %v143_v27 = vsub.f32 %v1505_v14, %v1613_v46  ;;  %v160_v26 = vsub.f32 %v1513_v17, %v1625_v24 }
  0x9d   :  { %454 = vxpose.xlu1.b32.cont [2/8] (short) %v1353_v59, 128  ;;  %v1355_v1 = vpop.eup %1354  ;;  %1364 = vpow2.f32 %v359_v15  ;;  %v248_v57 = vmul.f32 %v184_v37, %v1533_v28  ;;  %v144_v28 = vsub.f32 %v1513_v17, %v1613_v46 }
  0x9e   :  { %v1357_v5 = vpop.eup %1356  ;;  %1366 = vpow2.f32 %v373_v22  ;;  %v232_v22 = vmul.f32 %v168_v13, %v1557_v39  ;;  %v224_v49 = vmul.f32 -48.020004, %v160_v26 }
  0x9f   :  { %v1359_v12 = vpop.eup %1358  ;;  %1368 = vpow2.f32 %v375_v23  ;;  %v176_v23 = vmul.f32 -48.020004, %v1597_v2 }
  0xa0   :  { %423 = vxpose.xlu0.b32.cont [3/8] (short) %v1355_v1, 128  ;;  %v1361_v16 = vpop.eup %1360  ;;  %v391_v1 = vmul.f32 1.442695, %v278_v61  ;;  %1370 = vpow2.f32 %v389_v0  ;;  %v199_v61 = vmul.f32 -48.020004, %v135_v50 }
  0xa1   :  { %455 = vxpose.xlu1.b32.cont [3/8] (short) %v1357_v5, 128  ;;  %v1363_v44 = vpop.eup %1362  ;;  %v405_v5 = vmul.f32 1.442695, %v285_v33  ;;  %v331_v33 = vmul.f32 1.442695, %v248_v57 }
  0xa2   :  { %1372 = vpow2.f32 %v391_v1 }
  0xa3   :  { %1374 = vpow2.f32 %v405_v5  ;;  %v207_v5 = vmul.f32 -48.020004, %v143_v27 }
  0xa4   :  { %424 = vxpose.xlu0.b32.cont [4/8] (short) %v1359_v12, 128  ;;  %1376 = vpow2.f32 %v407_v34  ;;  %v167_v12 = vmul.f32 -48.020004, %v1554_v38  ;;  %v263_v34 = vmul.f32 %v199_v61, %v135_v50 }
  0xa5   :  { %456 = vxpose.xlu1.b32.cont [4/8] (short) %v1361_v16, 128  ;;  %v175_v16 = vmul.f32 -48.020004, %v1594_v63 }
  0xa6   :  { %v231_v15 = vmul.f32 %v167_v12, %v1554_v38  ;;  %v192_v38 = vmul.f32 -48.020004, %v1575_v52  ;;  %v271_v12 = vmul.f32 %v207_v5, %v143_v27  ;;  %v361_v13 = vmul.f32 1.442695, %v263_v34 }
  0xa7   :  { %v1365_v45 = vpop.eup %1364  ;;  %v239_v36 = vmul.f32 %v175_v16, %v1594_v63 }
  0xa8   :  { %425 = vxpose.xlu0.b32.cont [5/8] (short) %v1363_v44, 128  ;;  %v1367_v58 = vpop.eup %1366  ;;  %v297_v35 = vmul.f32 1.442695, %v231_v15  ;;  %v299_v44 = vmul.f32 1.442695, %v232_v22  ;;  %v159_v15 = vsub.f32 %v1505_v14, %v1625_v24 }
  0xa9   :  { %457 = vxpose.xlu1.b32.cont [5/8] (short) %v1365_v45, 128  ;;  %v1369_v59 = vpop.eup %1368  ;;  %v240_v45 = vmul.f32 %v176_v23, %v1597_v2  ;;  %v313_v39 = vmul.f32 1.442695, %v239_v36  ;;  %v255_v2 = vmul.f32 %v191_v48, %v1572_v51  ;;  %v151_v51 = vsub.f32 %v1505_v14, %v1627_v25 }
  0xaa   :  { %v1371_v8 = vpop.eup %1370  ;;  %1378 = vpow2.f32 %v297_v35 }
  0xab   :  { %1380 = vpow2.f32 %v299_v44  ;;  %v315_v63 = vmul.f32 1.442695, %v240_v45  ;;  %v345_v0 = vmul.f32 1.442695, %v255_v2  ;;  %v215_v16 = vmul.f32 -48.020004, %v151_v51 }
  0xac   :  { %426 = vxpose.xlu0.b32.cont [6/8] (short) %v1367_v58, 128  ;;  %v1373_v9 = vpop.eup %1372  ;;  %v136_v58 = vsub.f32 %v1513_v17, %v1615_v47  ;;  %1382 = vpow2.f32 %v313_v39  ;;  %v377_v44 = vmul.f32 1.442695, %v271_v12  ;;  %v223_v45 = vmul.f32 -48.020004, %v159_v15 }
  0xad   :  { %458 = vxpose.xlu1.b32.cont [6/8] (short) %v1369_v59, 128  ;;  %v1375_v10 = vpop.eup %1374  ;;  %v256_v59 = vmul.f32 %v192_v38, %v1575_v52  ;;  %1384 = vpow2.f32 %v315_v63  ;;  %v208_v52 = vmul.f32 -48.020004, %v144_v28  ;;  %v279_v48 = vmul.f32 %v215_v16, %v151_v51 }
  0xae   :  { %v1377_v11 = vpop.eup %1376  ;;  %v200_v62 = vmul.f32 -48.020004, %v136_v58  ;;  %1386 = vpow2.f32 %v329_v60  ;;  %v287_v63 = vmul.f32 %v223_v45, %v159_v15  ;;  %v288_v2 = vmul.f32 %v224_v49, %v160_v26 }
  0xaf   :  { %v347_v1 = vmul.f32 1.442695, %v256_v59  ;;  %1388 = vpow2.f32 %v331_v33  ;;  %v272_v22 = vmul.f32 %v208_v52, %v144_v28  ;;  %v169_v51 = vmul.f32 -48.020004, %v1560_v40 }
  0xb0   :  { %427 = vxpose.xlu0.b32.cont [7/8] (short) %v1371_v8, 128  ;;  %v264_v8 = vmul.f32 %v200_v62, %v136_v58  ;;  %1390 = vpow2.f32 %v345_v0  ;;  %v409_v60 = vmul.f32 1.442695, %v287_v63  ;;  %v411_v27 = vmul.f32 1.442695, %v288_v2 }
  0xb1   :  { %459 = vxpose.xlu1.b32.cont [7/8] (short) %v1373_v9, 128  ;;  %v152_v9 = vsub.f32 %v1513_v17, %v1627_v25  ;;  %1392 = vpow2.f32 %v347_v1  ;;  %v379_v38 = vmul.f32 1.442695, %v272_v22  ;;  %v393_v17 = vmul.f32 1.442695, %v279_v48 }
  0xb2   :  { %v363_v23 = vmul.f32 1.442695, %v264_v8  ;;  %1394 = vpow2.f32 %v361_v13  ;;  %v170_v52 = vmul.f32 -48.020004, %v1563_v41  ;;  %v233_v8 = vmul.f32 %v169_v51, %v1560_v40 }
  0xb3   :  { %v216_v35 = vmul.f32 -48.020004, %v152_v9  ;;  %v185_v12 = vmul.f32 -48.020004, %v1536_v29  ;;  %v186_v16 = vmul.f32 -48.020004, %v1539_v30 }
  0xb4   :  { %428 = vxpose.xlu0.b32.end [8/8] (short) %v1375_v10, 128  ;;  %v1379_v10 = vpop.eup %1378  ;;  %1396 = vpow2.f32 %v363_v23  ;;  %v301_v13 = vmul.f32 1.442695, %v233_v8  ;;  %v193_v26 = vmul.f32 -48.020004, %v1578_v53  ;;  %v194_v40 = vmul.f32 -48.020004, %v1581_v54 }
  0xb5   :  { %460 = vxpose.xlu1.b32.end [8/8] (short) %v1377_v11, 128  ;;  %v1381_v11 = vpop.eup %1380  ;;  %v280_v14 = vmul.f32 %v216_v35, %v152_v9  ;;  %1398 = vpow2.f32 %v377_v44  ;;  %v177_v9 = vmul.f32 -48.020004, %v1600_v3  ;;  %v249_v35 = vmul.f32 %v185_v12, %v1536_v29 }
  0xb6   :  { %v1383_v36 = vpop.eup %1382  ;;  %1400 = vpow2.f32 %v379_v38  ;;  %v138_v44 = vsub.f32 %v1517_v19, %v1615_v47  ;;  %v258_v45 = vmul.f32 %v194_v40, %v1581_v54  ;;  %v145_v29 = vsub.f32 %v1515_v18, %v1613_v46 }
  0xb7   :  { %v1385_v37 = vpop.eup %1384  ;;  %v395_v59 = vmul.f32 1.442695, %v280_v14  ;;  %1402 = vpow2.f32 %v393_v17  ;;  %v241_v15 = vmul.f32 %v177_v9, %v1600_v3  ;;  %v333_v48 = vmul.f32 1.442695, %v249_v35 }
  0xb8   :  { %v1387_v39 = vpop.eup %1386  ;;  %v202_v14 = vmul.f32 -48.020004, %v138_v44 }
  0xb9   :  { %v1389_v50 = vpop.eup %1388  ;;  %1404 = vpow2.f32 %v395_v59 }
  0xba   :  { %v1391_v57 = vpop.eup %1390  ;;  %1406 = vpow2.f32 %v409_v60  ;;  %v266_v17 = vmul.f32 %v202_v14, %v138_v44 }
  0xbb   :  { %v1393_v58 = vpop.eup %1392  ;;  %1408 = vpow2.f32 %v411_v27 }
  0xbc   :  { %v1395_v61 = vpop.eup %1394  ;;  %1410 = vpow2.f32 %v301_v13 }
  0xbe   :  { %v1397_v33 = vpop.eup %1396 }
  0xbf   :  { %v1399_v28 = vpop.eup %1398 }
  0xc0   :  { %v1401_v62 = vpop.eup %1400 }
  0xc1   :  { %v1403_v0 = vpop.eup %1402 }
  0xc3   :  { %v1405_v1 = vpop.eup %1404 }
  0xc4   :  { %v1407_v5 = vpop.eup %1406 }
  0xc5   :  { %v1409_v34 = vpop.eup %1408 }
  0xc6   :  { %v1411_v2 = vpop.eup %1410 }
  0xd5   :  { %485 = vxpose.xlu0.b32.start [1/8] (short) %v1379_v10, 128  ;;  %v234_v10 = vmul.f32 %v170_v52, %v1563_v41  ;;  %v317_v41 = vmul.f32 1.442695, %v241_v15 }
  0xd6   :  { %517 = vxpose.xlu1.b32.start [1/8] (short) %v1381_v11, 128  ;;  %v178_v11 = vmul.f32 -48.020004, %v1603_v4 }
  0xd7   :  { %v303_v22 = vmul.f32 1.442695, %v234_v10 }
  0xd8   :  { %v242_v23 = vmul.f32 %v178_v11, %v1603_v4  ;;  %v257_v4 = vmul.f32 %v193_v26, %v1578_v53  ;;  %v153_v53 = vsub.f32 %v1515_v18, %v1627_v25 }
  0xd9   :  { %486 = vxpose.xlu0.b32.cont [2/8] (short) %v1383_v36, 128  ;;  %v137_v36 = vsub.f32 %v1515_v18, %v1615_v47  ;;  %1412 = vpow2.f32 %v303_v22 }
  0xda   :  { %518 = vxpose.xlu1.b32.cont [2/8] (short) %v1385_v37, 128  ;;  %v250_v37 = vmul.f32 %v186_v16, %v1539_v30  ;;  %v319_v3 = vmul.f32 1.442695, %v242_v23  ;;  %1414 = vpow2.f32 %v317_v41  ;;  %v146_v30 = vsub.f32 %v1517_v19, %v1613_v46 }
  0xdb   :  { %v201_v38 = vmul.f32 -48.020004, %v137_v36 }
  0xdc   :  { %v335_v49 = vmul.f32 1.442695, %v250_v37  ;;  %1416 = vpow2.f32 %v319_v3  ;;  %v210_v54 = vmul.f32 -48.020004, %v146_v30 }
  0xdd   :  { %487 = vxpose.xlu0.b32.cont [3/8] (short) %v1387_v39, 128  ;;  %v349_v39 = vmul.f32 1.442695, %v257_v4  ;;  %1418 = vpow2.f32 %v333_v48  ;;  %v265_v63 = vmul.f32 %v201_v38, %v137_v36 }
  0xde   :  { %519 = vxpose.xlu1.b32.cont [3/8] (short) %v1389_v50, 128  ;;  %v351_v50 = vmul.f32 1.442695, %v258_v45  ;;  %1420 = vpow2.f32 %v335_v49 }
  0xdf   :  { %1422 = vpow2.f32 %v349_v39  ;;  %v365_v27 = vmul.f32 1.442695, %v265_v63 }
  0xe0   :  { %1424 = vpow2.f32 %v351_v50 }
  0xe1   :  { %488 = vxpose.xlu0.b32.cont [4/8] (short) %v1391_v57, 128  ;;  %v209_v57 = vmul.f32 -48.020004, %v145_v29  ;;  %1426 = vpow2.f32 %v365_v27 }
  0xe2   :  { %520 = vxpose.xlu1.b32.cont [4/8] (short) %v1393_v58, 128  ;;  %v154_v58 = vsub.f32 %v1517_v19, %v1627_v25 }
  0xe3   :  { %v1413_v59 = vpop.eup %1412  ;;  %v273_v60 = vmul.f32 %v209_v57, %v145_v29 }
  0xe5   :  { %489 = vxpose.xlu0.b32.cont [5/8] (short) %v1395_v61, 128  ;;  %v161_v61 = vsub.f32 %v1515_v18, %v1625_v24  ;;  %v381_v51 = vmul.f32 1.442695, %v273_v60 }
  0xe6   :  { %521 = vxpose.xlu1.b32.cont [5/8] (short) %v1397_v33, 128  ;;  %v217_v33 = vmul.f32 -48.020004, %v153_v53 }
  0xe7   :  { %v225_v52 = vmul.f32 -48.020004, %v161_v61 }
  0xe8   :  { %v281_v8 = vmul.f32 %v217_v33, %v153_v53 }
  0xe9   :  { %490 = vxpose.xlu0.b32.cont [6/8] (short) %v1399_v28, 128  ;;  %v274_v28 = vmul.f32 %v210_v54, %v146_v30  ;;  %v289_v16 = vmul.f32 %v225_v52, %v161_v61 }
  0xea   :  { %522 = vxpose.xlu1.b32.cont [6/8] (short) %v1401_v62, 128  ;;  %v367_v62 = vmul.f32 1.442695, %v266_v17  ;;  %v397_v22 = vmul.f32 1.442695, %v281_v8 }
  0xeb   :  { %v383_v9 = vmul.f32 1.442695, %v274_v28  ;;  %v413_v36 = vmul.f32 1.442695, %v289_v16  ;;  %v179_v16 = vmul.f32 -48.020004, %v1607_v6 }
  0xec   :  { %1428 = vpow2.f32 %v367_v62 }
  0xed   :  { %491 = vxpose.xlu0.b32.cont [7/8] (short) %v1403_v0, 128  ;;  %v162_v0 = vsub.f32 %v1517_v19, %v1625_v24  ;;  %1430 = vpow2.f32 %v381_v51 }
  0xee   :  { %523 = vxpose.xlu1.b32.cont [7/8] (short) %v1405_v1, 128  ;;  %v218_v1 = vmul.f32 -48.020004, %v154_v58  ;;  %1432 = vpow2.f32 %v383_v9 }
  0xef   :  { %v226_v18 = vmul.f32 -48.020004, %v162_v0  ;;  %1434 = vpow2.f32 %v397_v22 }
  0xf0   :  { %v282_v10 = vmul.f32 %v218_v1, %v154_v58 }
  0xf1   :  { %492 = vxpose.xlu0.b32.end [8/8] (short) %v1407_v5, 128  ;;  %v1415_v5 = vpop.eup %1414  ;;  %v290_v26 = vmul.f32 %v226_v18, %v162_v0  ;;  %v171_v18 = vmul.f32 -48.020004, %v1566_v42 }
  0xf2   :  { %524 = vxpose.xlu1.b32.end [8/8] (short) %v1409_v34, 128  ;;  %v1417_v34 = vpop.eup %1416  ;;  %v399_v40 = vmul.f32 1.442695, %v282_v10 }
  0xf3   :  { %v1419_v12 = vpop.eup %1418  ;;  %v415_v37 = vmul.f32 1.442695, %v290_v26 }
  0xf4   :  { %v1421_v19 = vpop.eup %1420  ;;  %1436 = vpow2.f32 %v399_v40  ;;  %v180_v40 = vmul.f32 -48.020004, %v1610_v7 }
  0xf5   :  { %v1423_v15 = vpop.eup %1422  ;;  %1438 = vpow2.f32 %v413_v36 }
  0xf6   :  { %v1425_v23 = vpop.eup %1424  ;;  %1440 = vpow2.f32 %v415_v37  ;;  %v243_v37 = vmul.f32 %v179_v16, %v1607_v6  ;;  %v195_v6 = vmul.f32 -48.020004, %v1584_v55 }
  0xf7   :  { %v1427_v4 = vpop.eup %1426 }
  0xf8   :  { %v1429_v29 = vpop.eup %1428 }
  0xf9   :  { %v1431_v30 = vpop.eup %1430 }
  0xfa   :  { %v1433_v50 = vpop.eup %1432 }
  0xfb   :  { %v1435_v53 = vpop.eup %1434 }
  0xfe   :  { %v1437_v58 = vpop.eup %1436 }
  0xff   :  { %v1439_v60 = vpop.eup %1438 }
 0x100   :  { %v1441_v33 = vpop.eup %1440 }
 0x112   :  { %549 = vxpose.xlu0.b32.start [1/8] (short) %v1411_v2, 128 }
 0x113   :  { %581 = vxpose.xlu1.b32.start [1/8] (short) %v1413_v59, 128 }
 0x116   :  { %550 = vxpose.xlu0.b32.cont [2/8] (short) %v1415_v5, 128 }
 0x117   :  { %582 = vxpose.xlu1.b32.cont [2/8] (short) %v1417_v34, 128 }
 0x118   :  { %v437_v11 = vpop.trf.xlu0 }
 0x119   :  { %v469_v13 = vpop.trf.xlu1  ;;  %678 = vst.msk [vmem:[#allocation2] sm:$0xff] %vm677_vm0, %v437_v11 }
 0x11a   :  { %694 = vst.msk [vmem:[#allocation2 + $0x80] sm:$0xff] %vm677_vm0, %v469_v13  ;;  %551 = vxpose.xlu0.b32.cont [3/8] (short) %v1419_v12, 128  ;;  %v172_v12 = vmul.f32 -48.020004, %v1569_v43 }
 0x11b   :  { %583 = vxpose.xlu1.b32.cont [3/8] (short) %v1421_v19, 128 }
 0x11c   :  { %v438_v35 = vpop.trf.xlu0  ;;  %v236_v26 = vmul.f32 %v172_v12, %v1569_v43 }
 0x11d   :  { %v470_v41 = vpop.trf.xlu1  ;;  %679 = vst.msk [vmem:[#allocation2 + $0x8] sm:$0xff] %vm677_vm0, %v438_v35 }
 0x11e   :  { %695 = vst.msk [vmem:[#allocation2 + $0x88] sm:$0xff] %vm677_vm0, %v470_v41  ;;  %552 = vxpose.xlu0.b32.cont [4/8] (short) %v1423_v15, 128  ;;  %v235_v15 = vmul.f32 %v171_v18, %v1566_v42  ;;  %v187_v41 = vmul.f32 -48.020004, %v1542_v31 }
 0x11f   :  { %584 = vxpose.xlu1.b32.cont [4/8] (short) %v1425_v23, 128 }
 0x120   :  { %v1083_v3 = vld [vmem:[#allocation2] sm:$0xff]  ;;  %v439_v44 = vpop.trf.xlu0  ;;  %v305_v36 = vmul.f32 1.442695, %v235_v15 }
 0x121   :  { %v1115_v45 = vld [vmem:[#allocation2 + $0x80] sm:$0xff]  ;;  %1084 = vst [vmem:[%s2235_s2] sm:$0xff] %v1083_v3  ;;  %v471_v48 = vpop.trf.xlu1  ;;  %680 = vst.msk [vmem:[#allocation2 + $0x10] sm:$0xff] %vm677_vm0, %v439_v44  ;;  %v188_v44 = vmul.f32 -48.020004, %v1545_v32 }
 0x122   :  { %1116 = vst [vmem:[%s2235_s2 + $0x80] sm:$0xff] %v1115_v45  ;;  %696 = vst.msk [vmem:[#allocation2 + $0x90] sm:$0xff] %vm677_vm0, %v471_v48  ;;  %553 = vxpose.xlu0.b32.cont [5/8] (short) %v1427_v4, 128  ;;  %v307_v4 = vmul.f32 1.442695, %v236_v26  ;;  %v244_v45 = vmul.f32 %v180_v40, %v1610_v7  ;;  %v196_v48 = vmul.f32 -48.020004, %v1587_v56  ;;  %1442 = vpow2.f32 %v305_v36 }
 0x123   :  { %585 = vxpose.xlu1.b32.cont [5/8] (short) %v1429_v29, 128 }
 0x124   :  { %v1085_v38 = vld [vmem:[#allocation2 + $0x8] sm:$0xff]  ;;  %v440_v49 = vpop.trf.xlu0  ;;  %1444 = vpow2.f32 %v307_v4 }
 0x125   :  { %v1117_v14 = vld [vmem:[#allocation2 + $0x88] sm:$0xff]  ;;  %1086 = vst [vmem:[%s2235_s2 + $0x8] sm:$0xff] %v1085_v38  ;;  %v472_v39 = vpop.trf.xlu1  ;;  %681 = vst.msk [vmem:[#allocation2 + $0x18] sm:$0xff] %vm677_vm0, %v440_v49  ;;  %v251_v49 = vmul.f32 %v187_v41, %v1542_v31  ;;  %v140_v31 = vsub.f32 %v1521_v21, %v1615_v47 }
 0x126   :  { %1118 = vst [vmem:[%s2235_s2 + $0x88] sm:$0xff] %v1117_v14  ;;  %697 = vst.msk [vmem:[#allocation2 + $0x98] sm:$0xff] %vm677_vm0, %v472_v39  ;;  %554 = vxpose.xlu0.b32.cont [6/8] (short) %v1431_v30, 128  ;;  %v321_v30 = vmul.f32 1.442695, %v243_v37  ;;  %v139_v14 = vsub.f32 %v1519_v20, %v1615_v47 }
 0x127   :  { %586 = vxpose.xlu1.b32.cont [6/8] (short) %v1433_v50, 128  ;;  %v252_v50 = vmul.f32 %v188_v44, %v1545_v32  ;;  %v147_v32 = vsub.f32 %v1519_v20, %v1613_v46 }
 0x128   :  { %v1087_v57 = vld [vmem:[#allocation2 + $0x10] sm:$0xff]  ;;  %v441_v63 = vpop.trf.xlu0  ;;  %1446 = vpow2.f32 %v321_v30 }
 0x129   :  { %v1119_v54 = vld [vmem:[#allocation2 + $0x90] sm:$0xff]  ;;  %1088 = vst [vmem:[%s2235_s2 + $0x10] sm:$0xff] %v1087_v57  ;;  %v473_v17 = vpop.trf.xlu1  ;;  %682 = vst.msk [vmem:[#allocation2 + $0x20] sm:$0xff] %vm677_vm0, %v441_v63  ;;  %v323_v57 = vmul.f32 1.442695, %v244_v45  ;;  %v259_v63 = vmul.f32 %v195_v6, %v1584_v55  ;;  %v148_v55 = vsub.f32 %v1521_v21, %v1613_v46 }
 0x12a   :  { %1120 = vst [vmem:[%s2235_s2 + $0x90] sm:$0xff] %v1119_v54  ;;  %698 = vst.msk [vmem:[#allocation2 + $0xa0] sm:$0xff] %vm677_vm0, %v473_v17  ;;  %555 = vxpose.xlu0.b32.cont [7/8] (short) %v1435_v53, 128  ;;  %v260_v53 = vmul.f32 %v196_v48, %v1587_v56  ;;  %v204_v56 = vmul.f32 -48.020004, %v140_v31 }
 0x12b   :  { %587 = vxpose.xlu1.b32.cont [7/8] (short) %v1437_v58, 128  ;;  %v337_v58 = vmul.f32 1.442695, %v251_v49  ;;  %1448 = vpow2.f32 %v323_v57 }
 0x12c   :  { %v1089_v2 = vld [vmem:[#allocation2 + $0x18] sm:$0xff]  ;;  %v442_v59 = vpop.trf.xlu0 }
 0x12d   :  { %v1121_v27 = vld [vmem:[#allocation2 + $0x98] sm:$0xff]  ;;  %1090 = vst [vmem:[%s2235_s2 + $0x18] sm:$0xff] %v1089_v2  ;;  %v474_v61 = vpop.trf.xlu1  ;;  %683 = vst.msk [vmem:[#allocation2 + $0x28] sm:$0xff] %vm677_vm0, %v442_v59  ;;  %v203_v2 = vmul.f32 -48.020004, %v139_v14  ;;  %1450 = vpow2.f32 %v337_v58 }
 0x12e   :  { %1122 = vst [vmem:[%s2235_s2 + $0x98] sm:$0xff] %v1121_v27  ;;  %699 = vst.msk [vmem:[#allocation2 + $0xa8] sm:$0xff] %vm677_vm0, %v474_v61  ;;  %556 = vxpose.xlu0.b32.end [8/8] (short) %v1439_v60, 128  ;;  %v339_v60 = vmul.f32 1.442695, %v252_v50  ;;  %v353_v27 = vmul.f32 1.442695, %v259_v63 }
 0x12f   :  { %588 = vxpose.xlu1.b32.end [8/8] (short) %v1441_v33, 128  ;;  %v355_v61 = vmul.f32 1.442695, %v260_v53 }
 0x130   :  { %v1091_v28 = vld [vmem:[#allocation2 + $0x20] sm:$0xff]  ;;  %v443_v62 = vpop.trf.xlu0  ;;  %1452 = vpow2.f32 %v339_v60 }
 0x131   :  { %v1123_v0 = vld [vmem:[#allocation2 + $0xa0] sm:$0xff]  ;;  %1092 = vst [vmem:[%s2235_s2 + $0x20] sm:$0xff] %v1091_v28  ;;  %v475_v1 = vpop.trf.xlu1  ;;  %684 = vst.msk [vmem:[#allocation2 + $0x30] sm:$0xff] %vm677_vm0, %v443_v62  ;;  %v211_v62 = vmul.f32 -48.020004, %v147_v32  ;;  %1454 = vpow2.f32 %v353_v27 }
 0x132   :  { %1124 = vst [vmem:[%s2235_s2 + $0xa0] sm:$0xff] %v1123_v0  ;;  %700 = vst.msk [vmem:[#allocation2 + $0xb0] sm:$0xff] %vm677_vm0, %v475_v1  ;;  %v267_v0 = vmul.f32 %v203_v2, %v139_v14  ;;  %v155_v1 = vsub.f32 %v1519_v20, %v1627_v25  ;;  %1456 = vpow2.f32 %v355_v61 }
 0x134   :  { %v1093_v5 = vld [vmem:[#allocation2 + $0x28] sm:$0xff]  ;;  %v444_v34 = vpop.trf.xlu0  ;;  %v369_v12 = vmul.f32 1.442695, %v267_v0 }
 0x135   :  { %v1125_v51 = vld [vmem:[#allocation2 + $0xa8] sm:$0xff]  ;;  %1094 = vst [vmem:[%s2235_s2 + $0x28] sm:$0xff] %v1093_v5  ;;  %v476_v52 = vpop.trf.xlu1  ;;  %685 = vst.msk [vmem:[#allocation2 + $0x38] sm:$0xff] %vm677_vm0, %v444_v34  ;;  %v212_v34 = vmul.f32 -48.020004, %v148_v55 }
 0x136   :  { %1126 = vst [vmem:[%s2235_s2 + $0xa8] sm:$0xff] %v1125_v51  ;;  %701 = vst.msk [vmem:[#allocation2 + $0xb8] sm:$0xff] %vm677_vm0, %v476_v52  ;;  %v268_v51 = vmul.f32 %v204_v56, %v140_v31  ;;  %v156_v52 = vsub.f32 %v1521_v21, %v1627_v25  ;;  %1458 = vpow2.f32 %v369_v12 }
 0x137   :  { %v276_v16 = vmul.f32 %v212_v34, %v148_v55 }
 0x138   :  { %v1095_v8 = vld [vmem:[#allocation2 + $0x30] sm:$0xff]  ;;  %v445_v9 = vpop.trf.xlu0  ;;  %v220_v26 = vmul.f32 -48.020004, %v156_v52 }
 0x139   :  { %v1127_v10 = vld [vmem:[#allocation2 + $0xb0] sm:$0xff]  ;;  %1096 = vst [vmem:[%s2235_s2 + $0x30] sm:$0xff] %v1095_v8  ;;  %v477_v11 = vpop.trf.xlu1  ;;  %686 = vst.msk [vmem:[#allocation2 + $0x40] sm:$0xff] %vm677_vm0, %v445_v9  ;;  %v1443_v8 = vpop.eup %1442 }
 0x13a   :  { %1128 = vst [vmem:[%s2235_s2 + $0xb0] sm:$0xff] %v1127_v10  ;;  %702 = vst.msk [vmem:[#allocation2 + $0xc0] sm:$0xff] %vm677_vm0, %v477_v11  ;;  %v1445_v9 = vpop.eup %1444  ;;  %v275_v11 = vmul.f32 %v211_v62, %v147_v32  ;;  %v284_v44 = vmul.f32 %v220_v26, %v156_v52 }
 0x13c   :  { %v1097_v13 = vld [vmem:[#allocation2 + $0x38] sm:$0xff]  ;;  %v446_v19 = vpop.trf.xlu0  ;;  %v385_v41 = vmul.f32 1.442695, %v275_v11  ;;  %v403_v50 = vmul.f32 1.442695, %v284_v44 }
 0x13d   :  { %v1129_v22 = vld [vmem:[#allocation2 + $0xb8] sm:$0xff]  ;;  %1098 = vst [vmem:[%s2235_s2 + $0x38] sm:$0xff] %v1097_v13  ;;  %v478_v23 = vpop.trf.xlu1  ;;  %687 = vst.msk [vmem:[#allocation2 + $0x48] sm:$0xff] %vm677_vm0, %v446_v19  ;;  %v163_v13 = vsub.f32 %v1519_v20, %v1625_v24  ;;  %v219_v19 = vmul.f32 -48.020004, %v155_v1  ;;  %v1447_v20 = vpop.eup %1446 }
 0x13e   :  { %1130 = vst [vmem:[%s2235_s2 + $0xb8] sm:$0xff] %v1129_v22  ;;  %703 = vst.msk [vmem:[#allocation2 + $0xc8] sm:$0xff] %vm677_vm0, %v478_v23  ;;  %v371_v22 = vmul.f32 1.442695, %v268_v51  ;;  %v164_v23 = vsub.f32 %v1521_v21, %v1625_v24  ;;  %v1449_v40 = vpop.eup %1448  ;;  %v387_v24 = vmul.f32 1.442695, %v276_v16 }
 0x13f   :  { %v227_v36 = vmul.f32 -48.020004, %v163_v13  ;;  %v283_v37 = vmul.f32 %v219_v19, %v155_v1  ;;  %v1451_v4 = vpop.eup %1450 }
 0x140   :  { %v1099_v42 = vld [vmem:[#allocation2 + $0x40] sm:$0xff]  ;;  %v447_v35 = vpop.trf.xlu0  ;;  %1460 = vpow2.f32 %v371_v22  ;;  %v1453_v45 = vpop.eup %1452 }
 0x141   :  { %v1131_v3 = vld [vmem:[#allocation2 + $0xc0] sm:$0xff]  ;;  %1100 = vst [vmem:[%s2235_s2 + $0x40] sm:$0xff] %v1099_v42  ;;  %v479_v43 = vpop.trf.xlu1  ;;  %688 = vst.msk [vmem:[#allocation2 + $0x50] sm:$0xff] %vm677_vm0, %v447_v35  ;;  %1462 = vpow2.f32 %v385_v41  ;;  %v401_v49 = vmul.f32 1.442695, %v283_v37 }
 0x142   :  { %1132 = vst [vmem:[%s2235_s2 + $0xc0] sm:$0xff] %v1131_v3  ;;  %704 = vst.msk [vmem:[#allocation2 + $0xd0] sm:$0xff] %vm677_vm0, %v479_v43  ;;  %v228_v43 = vmul.f32 -48.020004, %v164_v23  ;;  %1464 = vpow2.f32 %v387_v24 }
 0x143   :  { %1466 = vpow2.f32 %v401_v49 }
 0x144   :  { %v1101_v29 = vld [vmem:[#allocation2 + $0x48] sm:$0xff]  ;;  %v448_v38 = vpop.trf.xlu0  ;;  %1468 = vpow2.f32 %v403_v50 }
 0x145   :  { %v1133_v7 = vld [vmem:[#allocation2 + $0xc8] sm:$0xff]  ;;  %1102 = vst [vmem:[%s2235_s2 + $0x48] sm:$0xff] %v1101_v29  ;;  %v480_v39 = vpop.trf.xlu1  ;;  %689 = vst.msk [vmem:[#allocation2 + $0x58] sm:$0xff] %vm677_vm0, %v448_v38  ;;  %v1455_v29 = vpop.eup %1454  ;;  %v291_v38 = vmul.f32 %v227_v36, %v163_v13 }
 0x146   :  { %1134 = vst [vmem:[%s2235_s2 + $0xc8] sm:$0xff] %v1133_v7  ;;  %705 = vst.msk [vmem:[#allocation2 + $0xd8] sm:$0xff] %vm677_vm0, %v480_v39  ;;  %v1457_v7 = vpop.eup %1456  ;;  %v292_v39 = vmul.f32 %v228_v43, %v164_v23 }
 0x147   :  { %v417_v63 = vmul.f32 1.442695, %v291_v38  ;;  %v1459_v58 = vpop.eup %1458 }
 0x148   :  { %v1103_v54 = vld [vmem:[#allocation2 + $0x50] sm:$0xff]  ;;  %v449_v17 = vpop.trf.xlu0 }
 0x149   :  { %v1135_v59 = vld [vmem:[#allocation2 + $0xd0] sm:$0xff]  ;;  %1104 = vst [vmem:[%s2235_s2 + $0x50] sm:$0xff] %v1103_v54  ;;  %v481_v47 = vpop.trf.xlu1  ;;  %690 = vst.msk [vmem:[#allocation2 + $0x60] sm:$0xff] %vm677_vm0, %v449_v17  ;;  %v419_v17 = vmul.f32 1.442695, %v292_v39  ;;  %1470 = vpow2.f32 %v417_v63 }
 0x14a   :  { %1136 = vst [vmem:[%s2235_s2 + $0xd0] sm:$0xff] %v1135_v59  ;;  %706 = vst.msk [vmem:[#allocation2 + $0xe0] sm:$0xff] %vm677_vm0, %v481_v47  ;;  %v1461_v32 = vpop.eup %1460 }
 0x14b   :  { %1472 = vpow2.f32 %v419_v17  ;;  %v1463_v55 = vpop.eup %1462 }
 0x14c   :  { %v1105_v33 = vld [vmem:[#allocation2 + $0x58] sm:$0xff]  ;;  %v450_v28 = vpop.trf.xlu0  ;;  %v1465_v56 = vpop.eup %1464 }
 0x14d   :  { %v1137_v5 = vld [vmem:[#allocation2 + $0xd8] sm:$0xff]  ;;  %1106 = vst [vmem:[%s2235_s2 + $0x58] sm:$0xff] %v1105_v33  ;;  %v482_v46 = vpop.trf.xlu1  ;;  %691 = vst.msk [vmem:[#allocation2 + $0x68] sm:$0xff] %vm677_vm0, %v450_v28  ;;  %v1467_v62 = vpop.eup %1466 }
 0x14e   :  { %1138 = vst [vmem:[%s2235_s2 + $0xd8] sm:$0xff] %v1137_v5  ;;  %707 = vst.msk [vmem:[#allocation2 + $0xe8] sm:$0xff] %vm677_vm0, %v482_v46  ;;  %v1469_v0 = vpop.eup %1468 }
 0x150   :  { %v1107_v18 = vld [vmem:[#allocation2 + $0x60] sm:$0xff]  ;;  %v451_v10 = vpop.trf.xlu0  ;;  %613 = vxpose.xlu0.b32.start [1/8] (short) %v1443_v8, 128 }
 0x151   :  { %v1139_v25 = vld [vmem:[#allocation2 + $0xe0] sm:$0xff]  ;;  %1108 = vst [vmem:[%s2235_s2 + $0x60] sm:$0xff] %v1107_v18  ;;  %v483_v15 = vpop.trf.xlu1  ;;  %645 = vxpose.xlu1.b32.start [1/8] (short) %v1445_v9, 128  ;;  %692 = vst.msk [vmem:[#allocation2 + $0x70] sm:$0xff] %vm677_vm0, %v451_v10 }
 0x152   :  { %1140 = vst [vmem:[%s2235_s2 + $0xe0] sm:$0xff] %v1139_v25  ;;  %708 = vst.msk [vmem:[#allocation2 + $0xf0] sm:$0xff] %vm677_vm0, %v483_v15 }
 0x153   :  { %v1471_v51 = vpop.eup %1470 }
 0x154   :  { %v1109_v42 = vld [vmem:[#allocation2 + $0x68] sm:$0xff]  ;;  %614 = vxpose.xlu0.b32.cont [2/8] (short) %v1447_v20, 128  ;;  %v452_v35 = vpop.trf.xlu0 }
 0x155   :  { %v1141_v3 = vld [vmem:[#allocation2 + $0xe8] sm:$0xff]  ;;  %1110 = vst [vmem:[%s2235_s2 + $0x68] sm:$0xff] %v1109_v42  ;;  %646 = vxpose.xlu1.b32.cont [2/8] (short) %v1449_v40, 128  ;;  %693 = vst.msk [vmem:[#allocation2 + $0x78] sm:$0xff] %vm677_vm0, %v452_v35  ;;  %v484_v21 = vpop.trf.xlu1  ;;  %v1473_v52 = vpop.eup %1472 }
 0x156   :  { %1142 = vst [vmem:[%s2235_s2 + $0xe8] sm:$0xff] %v1141_v3  ;;  %709 = vst.msk [vmem:[#allocation2 + $0xf8] sm:$0xff] %vm677_vm0, %v484_v21 }
 0x158   :  { %v1111_v6 = vld [vmem:[#allocation2 + $0x70] sm:$0xff]  ;;  %615 = vxpose.xlu0.b32.cont [3/8] (short) %v1451_v4, 128  ;;  %v501_v48 = vpop.trf.xlu0 }
 0x159   :  { %v1143_v30 = vld [vmem:[#allocation2 + $0xf0] sm:$0xff]  ;;  %1112 = vst [vmem:[%s2235_s2 + $0x70] sm:$0xff] %v1111_v6  ;;  %647 = vxpose.xlu1.b32.cont [3/8] (short) %v1453_v45, 128  ;;  %710 = vst.msk [vmem:[#allocation2 + $0x100] sm:$0xff] %vm677_vm0, %v501_v48  ;;  %v533_v14 = vpop.trf.xlu1 }
 0x15a   :  { %1144 = vst [vmem:[%s2235_s2 + $0xf0] sm:$0xff] %v1143_v30  ;;  %726 = vst.msk [vmem:[#allocation2 + $0x180] sm:$0xff] %vm677_vm0, %v533_v14 }
 0x15c   :  { %v1113_v57 = vld [vmem:[#allocation2 + $0x78] sm:$0xff]  ;;  %616 = vxpose.xlu0.b32.cont [4/8] (short) %v1455_v29, 128  ;;  %v502_v31 = vpop.trf.xlu0 }
 0x15d   :  { %1114 = vst [vmem:[%s2235_s2 + $0x78] sm:$0xff] %v1113_v57  ;;  %648 = vxpose.xlu1.b32.cont [4/8] (short) %v1457_v7, 128  ;;  %v1145_v53 = vld [vmem:[#allocation2 + $0xf8] sm:$0xff]  ;;  %711 = vst.msk [vmem:[#allocation2 + $0x108] sm:$0xff] %vm677_vm0, %v502_v31  ;;  %v534_v54 = vpop.trf.xlu1 }
 0x15e   :  { %1146 = vst [vmem:[%s2235_s2 + $0xf8] sm:$0xff] %v1145_v53  ;;  %727 = vst.msk [vmem:[#allocation2 + $0x188] sm:$0xff] %vm677_vm0, %v534_v54 }
 0x160   :  { %v1147_v2 = vld [vmem:[#allocation2 + $0x100] sm:$0xff]  ;;  %617 = vxpose.xlu0.b32.cont [5/8] (short) %v1459_v58, 128  ;;  %v503_v59 = vpop.trf.xlu0 }
 0x161   :  { %1148 = vst [vmem:[%s2235_s2 + $0x100] sm:$0xff] %v1147_v2  ;;  %649 = vxpose.xlu1.b32.cont [5/8] (short) %v1461_v32, 128  ;;  %v1179_v47 = vld [vmem:[#allocation2 + $0x180] sm:$0xff]  ;;  %712 = vst.msk [vmem:[#allocation2 + $0x110] sm:$0xff] %vm677_vm0, %v503_v59  ;;  %v535_v60 = vpop.trf.xlu1 }
 0x162   :  { %1180 = vst [vmem:[%s2235_s2 + $0x180] sm:$0xff] %v1179_v47  ;;  %728 = vst.msk [vmem:[#allocation2 + $0x190] sm:$0xff] %vm677_vm0, %v535_v60 }
 0x164   :  { %v1149_v27 = vld [vmem:[#allocation2 + $0x108] sm:$0xff]  ;;  %618 = vxpose.xlu0.b32.cont [6/8] (short) %v1463_v55, 128  ;;  %v504_v61 = vpop.trf.xlu0 }
 0x165   :  { %1150 = vst [vmem:[%s2235_s2 + $0x108] sm:$0xff] %v1149_v27  ;;  %650 = vxpose.xlu1.b32.cont [6/8] (short) %v1465_v56, 128  ;;  %v1181_v33 = vld [vmem:[#allocation2 + $0x188] sm:$0xff]  ;;  %713 = vst.msk [vmem:[#allocation2 + $0x118] sm:$0xff] %vm677_vm0, %v504_v61  ;;  %v536_v28 = vpop.trf.xlu1 }
 0x166   :  { %1182 = vst [vmem:[%s2235_s2 + $0x188] sm:$0xff] %v1181_v33  ;;  %729 = vst.msk [vmem:[#allocation2 + $0x198] sm:$0xff] %vm677_vm0, %v536_v28 }
 0x168   :  { %v1151_v1 = vld [vmem:[#allocation2 + $0x110] sm:$0xff]  ;;  %619 = vxpose.xlu0.b32.cont [7/8] (short) %v1467_v62, 128  ;;  %v505_v5 = vpop.trf.xlu0 }
 0x169   :  { %1152 = vst [vmem:[%s2235_s2 + $0x110] sm:$0xff] %v1151_v1  ;;  %651 = vxpose.xlu1.b32.cont [7/8] (short) %v1469_v0, 128  ;;  %v1183_v46 = vld [vmem:[#allocation2 + $0x190] sm:$0xff]  ;;  %714 = vst.msk [vmem:[#allocation2 + $0x120] sm:$0xff] %vm677_vm0, %v505_v5  ;;  %v537_v34 = vpop.trf.xlu1 }
 0x16a   :  { %1184 = vst [vmem:[%s2235_s2 + $0x190] sm:$0xff] %v1183_v46  ;;  %730 = vst.msk [vmem:[#allocation2 + $0x1a0] sm:$0xff] %vm677_vm0, %v537_v34 }
 0x16c   :  { %v1153_v8 = vld [vmem:[#allocation2 + $0x118] sm:$0xff]  ;;  %620 = vxpose.xlu0.b32.end [8/8] (short) %v1471_v51, 128  ;;  %v506_v9 = vpop.trf.xlu0 }
 0x16d   :  { %1154 = vst [vmem:[%s2235_s2 + $0x118] sm:$0xff] %v1153_v8  ;;  %652 = vxpose.xlu1.b32.end [8/8] (short) %v1473_v52, 128  ;;  %v1185_v18 = vld [vmem:[#allocation2 + $0x198] sm:$0xff]  ;;  %715 = vst.msk [vmem:[#allocation2 + $0x128] sm:$0xff] %vm677_vm0, %v506_v9  ;;  %v538_v10 = vpop.trf.xlu1 }
 0x16e   :  { %1186 = vst [vmem:[%s2235_s2 + $0x198] sm:$0xff] %v1185_v18  ;;  %731 = vst.msk [vmem:[#allocation2 + $0x1a8] sm:$0xff] %vm677_vm0, %v538_v10 }
 0x170   :  { %v1155_v11 = vld [vmem:[#allocation2 + $0x120] sm:$0xff]  ;;  %v507_v12 = vpop.trf.xlu0 }
 0x171   :  { %1156 = vst [vmem:[%s2235_s2 + $0x120] sm:$0xff] %v1155_v11  ;;  %v1187_v13 = vld [vmem:[#allocation2 + $0x1a0] sm:$0xff]  ;;  %716 = vst.msk [vmem:[#allocation2 + $0x130] sm:$0xff] %vm677_vm0, %v507_v12  ;;  %v539_v19 = vpop.trf.xlu1 }
 0x172   :  { %1188 = vst [vmem:[%s2235_s2 + $0x1a0] sm:$0xff] %v1187_v13  ;;  %732 = vst.msk [vmem:[#allocation2 + $0x1b0] sm:$0xff] %vm677_vm0, %v539_v19 }
 0x174   :  { %v1157_v25 = vld [vmem:[#allocation2 + $0x128] sm:$0xff]  ;;  %v508_v15 = vpop.trf.xlu0 }
 0x175   :  { %1158 = vst [vmem:[%s2235_s2 + $0x128] sm:$0xff] %v1157_v25  ;;  %v1189_v16 = vld [vmem:[#allocation2 + $0x1a8] sm:$0xff]  ;;  %717 = vst.msk [vmem:[#allocation2 + $0x138] sm:$0xff] %vm677_vm0, %v508_v15  ;;  %v540_v22 = vpop.trf.xlu1 }
 0x176   :  { %1190 = vst [vmem:[%s2235_s2 + $0x1a8] sm:$0xff] %v1189_v16  ;;  %733 = vst.msk [vmem:[#allocation2 + $0x1b8] sm:$0xff] %vm677_vm0, %v540_v22 }
 0x178   :  { %v1159_v23 = vld [vmem:[#allocation2 + $0x130] sm:$0xff]  ;;  %v509_v26 = vpop.trf.xlu0 }
 0x179   :  { %1160 = vst [vmem:[%s2235_s2 + $0x130] sm:$0xff] %v1159_v23  ;;  %v1191_v20 = vld [vmem:[#allocation2 + $0x1b0] sm:$0xff]  ;;  %718 = vst.msk [vmem:[#allocation2 + $0x140] sm:$0xff] %vm677_vm0, %v509_v26  ;;  %v541_v40 = vpop.trf.xlu1 }
 0x17a   :  { %1192 = vst [vmem:[%s2235_s2 + $0x1b0] sm:$0xff] %v1191_v20  ;;  %734 = vst.msk [vmem:[#allocation2 + $0x1c0] sm:$0xff] %vm677_vm0, %v541_v40 }
 0x17c   :  { %v1161_v42 = vld [vmem:[#allocation2 + $0x138] sm:$0xff]  ;;  %v510_v35 = vpop.trf.xlu0 }
 0x17d   :  { %1162 = vst [vmem:[%s2235_s2 + $0x138] sm:$0xff] %v1161_v42  ;;  %v1193_v41 = vld [vmem:[#allocation2 + $0x1b8] sm:$0xff]  ;;  %719 = vst.msk [vmem:[#allocation2 + $0x148] sm:$0xff] %vm677_vm0, %v510_v35  ;;  %v542_v36 = vpop.trf.xlu1 }
 0x17e   :  { %1194 = vst [vmem:[%s2235_s2 + $0x1b8] sm:$0xff] %v1193_v41  ;;  %735 = vst.msk [vmem:[#allocation2 + $0x1c8] sm:$0xff] %vm677_vm0, %v542_v36 }
 0x180   :  { %v1163_v37 = vld [vmem:[#allocation2 + $0x140] sm:$0xff]  ;;  %v511_v3 = vpop.trf.xlu0 }
 0x181   :  { %1164 = vst [vmem:[%s2235_s2 + $0x140] sm:$0xff] %v1163_v37  ;;  %v1195_v21 = vld [vmem:[#allocation2 + $0x1c0] sm:$0xff]  ;;  %720 = vst.msk [vmem:[#allocation2 + $0x150] sm:$0xff] %vm677_vm0, %v511_v3  ;;  %v543_v24 = vpop.trf.xlu1 }
 0x182   :  { %1196 = vst [vmem:[%s2235_s2 + $0x1c0] sm:$0xff] %v1195_v21  ;;  %736 = vst.msk [vmem:[#allocation2 + $0x1d0] sm:$0xff] %vm677_vm0, %v543_v24 }
 0x184   :  { %v1165_v43 = vld [vmem:[#allocation2 + $0x148] sm:$0xff]  ;;  %v512_v44 = vpop.trf.xlu0 }
 0x185   :  { %1166 = vst [vmem:[%s2235_s2 + $0x148] sm:$0xff] %v1165_v43  ;;  %v1197_v4 = vld [vmem:[#allocation2 + $0x1c8] sm:$0xff]  ;;  %721 = vst.msk [vmem:[#allocation2 + $0x158] sm:$0xff] %vm677_vm0, %v512_v44  ;;  %v544_v45 = vpop.trf.xlu1 }
 0x186   :  { %1198 = vst [vmem:[%s2235_s2 + $0x1c8] sm:$0xff] %v1197_v4  ;;  %737 = vst.msk [vmem:[#allocation2 + $0x1d8] sm:$0xff] %vm677_vm0, %v544_v45 }
 0x188   :  { %v1167_v6 = vld [vmem:[#allocation2 + $0x150] sm:$0xff]  ;;  %v513_v48 = vpop.trf.xlu0 }
 0x189   :  { %1168 = vst [vmem:[%s2235_s2 + $0x150] sm:$0xff] %v1167_v6  ;;  %v1199_v29 = vld [vmem:[#allocation2 + $0x1d0] sm:$0xff]  ;;  %722 = vst.msk [vmem:[#allocation2 + $0x160] sm:$0xff] %vm677_vm0, %v513_v48  ;;  %v545_v38 = vpop.trf.xlu1 }
 0x18a   :  { %1200 = vst [vmem:[%s2235_s2 + $0x1d0] sm:$0xff] %v1199_v29  ;;  %738 = vst.msk [vmem:[#allocation2 + $0x1e0] sm:$0xff] %vm677_vm0, %v545_v38 }
 0x18c   :  { %v1169_v49 = vld [vmem:[#allocation2 + $0x158] sm:$0xff]  ;;  %v514_v30 = vpop.trf.xlu0 }
 0x18d   :  { %1170 = vst [vmem:[%s2235_s2 + $0x158] sm:$0xff] %v1169_v49  ;;  %v1201_v14 = vld [vmem:[#allocation2 + $0x1d8] sm:$0xff]  ;;  %723 = vst.msk [vmem:[#allocation2 + $0x168] sm:$0xff] %vm677_vm0, %v514_v30  ;;  %v546_v7 = vpop.trf.xlu1 }
 0x18e   :  { %1202 = vst [vmem:[%s2235_s2 + $0x1d8] sm:$0xff] %v1201_v14  ;;  %739 = vst.msk [vmem:[#allocation2 + $0x1e8] sm:$0xff] %vm677_vm0, %v546_v7 }
 0x190   :  { %v1171_v39 = vld [vmem:[#allocation2 + $0x160] sm:$0xff]  ;;  %v515_v50 = vpop.trf.xlu0 }
 0x191   :  { %1172 = vst [vmem:[%s2235_s2 + $0x160] sm:$0xff] %v1171_v39  ;;  %v1203_v57 = vld [vmem:[#allocation2 + $0x1e0] sm:$0xff]  ;;  %724 = vst.msk [vmem:[#allocation2 + $0x170] sm:$0xff] %vm677_vm0, %v515_v50  ;;  %v547_v31 = vpop.trf.xlu1 }
 0x192   :  { %1204 = vst [vmem:[%s2235_s2 + $0x1e0] sm:$0xff] %v1203_v57  ;;  %740 = vst.msk [vmem:[#allocation2 + $0x1f0] sm:$0xff] %vm677_vm0, %v547_v31 }
 0x194   :  { %v1173_v63 = vld [vmem:[#allocation2 + $0x168] sm:$0xff]  ;;  %v516_v53 = vpop.trf.xlu0 }
 0x195   :  { %1174 = vst [vmem:[%s2235_s2 + $0x168] sm:$0xff] %v1173_v63  ;;  %v1205_v54 = vld [vmem:[#allocation2 + $0x1e8] sm:$0xff]  ;;  %725 = vst.msk [vmem:[#allocation2 + $0x178] sm:$0xff] %vm677_vm0, %v516_v53  ;;  %v548_v17 = vpop.trf.xlu1 }
 0x196   :  { %1206 = vst [vmem:[%s2235_s2 + $0x1e8] sm:$0xff] %v1205_v54  ;;  %741 = vst.msk [vmem:[#allocation2 + $0x1f8] sm:$0xff] %vm677_vm0, %v548_v17 }
 0x198   :  { %v1175_v58 = vld [vmem:[#allocation2 + $0x170] sm:$0xff]  ;;  %v565_v32 = vpop.trf.xlu0 }
 0x199   :  { %1176 = vst [vmem:[%s2235_s2 + $0x170] sm:$0xff] %v1175_v58  ;;  %v1207_v2 = vld [vmem:[#allocation2 + $0x1f0] sm:$0xff]  ;;  %742 = vst.msk [vmem:[#allocation2 + $0x200] sm:$0xff] %vm677_vm0, %v565_v32  ;;  %v597_v59 = vpop.trf.xlu1 }
 0x19a   :  { %1208 = vst [vmem:[%s2235_s2 + $0x1f0] sm:$0xff] %v1207_v2  ;;  %758 = vst.msk [vmem:[#allocation2 + $0x280] sm:$0xff] %vm677_vm0, %v597_v59 }
 0x19c   :  { %v1177_v47 = vld [vmem:[#allocation2 + $0x178] sm:$0xff]  ;;  %v566_v60 = vpop.trf.xlu0 }
 0x19d   :  { %1178 = vst [vmem:[%s2235_s2 + $0x178] sm:$0xff] %v1177_v47  ;;  %v1209_v55 = vld [vmem:[#allocation2 + $0x1f8] sm:$0xff]  ;;  %743 = vst.msk [vmem:[#allocation2 + $0x208] sm:$0xff] %vm677_vm0, %v566_v60  ;;  %v598_v56 = vpop.trf.xlu1 }
 0x19e   :  { %1210 = vst [vmem:[%s2235_s2 + $0x1f8] sm:$0xff] %v1209_v55  ;;  %759 = vst.msk [vmem:[#allocation2 + $0x288] sm:$0xff] %vm677_vm0, %v598_v56 }
 0x1a0   :  { %v1211_v27 = vld [vmem:[#allocation2 + $0x200] sm:$0xff]  ;;  %v567_v61 = vpop.trf.xlu0 }
 0x1a1   :  { %1212 = vst [vmem:[%s2235_s2 + $0x200] sm:$0xff] %v1211_v27  ;;  %v1243_v33 = vld [vmem:[#allocation2 + $0x280] sm:$0xff]  ;;  %744 = vst.msk [vmem:[#allocation2 + $0x210] sm:$0xff] %vm677_vm0, %v567_v61  ;;  %v599_v28 = vpop.trf.xlu1 }
 0x1a2   :  { %1244 = vst [vmem:[%s2235_s2 + $0x280] sm:$0xff] %v1243_v33  ;;  %760 = vst.msk [vmem:[#allocation2 + $0x290] sm:$0xff] %vm677_vm0, %v599_v28 }
 0x1a4   :  { %v1213_v62 = vld [vmem:[#allocation2 + $0x208] sm:$0xff]  ;;  %v568_v0 = vpop.trf.xlu0 }
 0x1a5   :  { %1214 = vst [vmem:[%s2235_s2 + $0x208] sm:$0xff] %v1213_v62  ;;  %v1245_v1 = vld [vmem:[#allocation2 + $0x288] sm:$0xff]  ;;  %745 = vst.msk [vmem:[#allocation2 + $0x218] sm:$0xff] %vm677_vm0, %v568_v0  ;;  %v600_v5 = vpop.trf.xlu1 }
 0x1a6   :  { %1246 = vst [vmem:[%s2235_s2 + $0x288] sm:$0xff] %v1245_v1  ;;  %761 = vst.msk [vmem:[#allocation2 + $0x298] sm:$0xff] %vm677_vm0, %v600_v5 }
 0x1a8   :  { %v1215_v46 = vld [vmem:[#allocation2 + $0x210] sm:$0xff]  ;;  %v569_v34 = vpop.trf.xlu0 }
 0x1a9   :  { %1216 = vst [vmem:[%s2235_s2 + $0x210] sm:$0xff] %v1215_v46  ;;  %v1247_v51 = vld [vmem:[#allocation2 + $0x290] sm:$0xff]  ;;  %746 = vst.msk [vmem:[#allocation2 + $0x220] sm:$0xff] %vm677_vm0, %v569_v34  ;;  %v601_v52 = vpop.trf.xlu1 }
 0x1aa   :  { %1248 = vst [vmem:[%s2235_s2 + $0x290] sm:$0xff] %v1247_v51  ;;  %762 = vst.msk [vmem:[#allocation2 + $0x2a0] sm:$0xff] %vm677_vm0, %v601_v52 }
 0x1ac   :  { %v1217_v8 = vld [vmem:[#allocation2 + $0x218] sm:$0xff]  ;;  %v570_v9 = vpop.trf.xlu0 }
 0x1ad   :  { %1218 = vst [vmem:[%s2235_s2 + $0x218] sm:$0xff] %v1217_v8  ;;  %v1249_v18 = vld [vmem:[#allocation2 + $0x298] sm:$0xff]  ;;  %747 = vst.msk [vmem:[#allocation2 + $0x228] sm:$0xff] %vm677_vm0, %v570_v9  ;;  %v602_v10 = vpop.trf.xlu1 }
 0x1ae   :  { %1250 = vst [vmem:[%s2235_s2 + $0x298] sm:$0xff] %v1249_v18  ;;  %763 = vst.msk [vmem:[#allocation2 + $0x2a8] sm:$0xff] %vm677_vm0, %v602_v10 }
 0x1b0   :  { %v1219_v11 = vld [vmem:[#allocation2 + $0x220] sm:$0xff]  ;;  %v571_v12 = vpop.trf.xlu0 }
 0x1b1   :  { %1220 = vst [vmem:[%s2235_s2 + $0x220] sm:$0xff] %v1219_v11  ;;  %v1251_v13 = vld [vmem:[#allocation2 + $0x2a0] sm:$0xff]  ;;  %748 = vst.msk [vmem:[#allocation2 + $0x230] sm:$0xff] %vm677_vm0, %v571_v12  ;;  %v603_v19 = vpop.trf.xlu1 }
 0x1b2   :  { %1252 = vst [vmem:[%s2235_s2 + $0x2a0] sm:$0xff] %v1251_v13  ;;  %764 = vst.msk [vmem:[#allocation2 + $0x2b0] sm:$0xff] %vm677_vm0, %v603_v19 }
 0x1b4   :  { %v1221_v25 = vld [vmem:[#allocation2 + $0x228] sm:$0xff]  ;;  %v572_v15 = vpop.trf.xlu0 }
 0x1b5   :  { %1222 = vst [vmem:[%s2235_s2 + $0x228] sm:$0xff] %v1221_v25  ;;  %v1253_v16 = vld [vmem:[#allocation2 + $0x2a8] sm:$0xff]  ;;  %749 = vst.msk [vmem:[#allocation2 + $0x238] sm:$0xff] %vm677_vm0, %v572_v15  ;;  %v604_v22 = vpop.trf.xlu1 }
 0x1b6   :  { %1254 = vst [vmem:[%s2235_s2 + $0x2a8] sm:$0xff] %v1253_v16  ;;  %765 = vst.msk [vmem:[#allocation2 + $0x2b8] sm:$0xff] %vm677_vm0, %v604_v22 }
 0x1b8   :  { %v1223_v23 = vld [vmem:[#allocation2 + $0x230] sm:$0xff]  ;;  %v573_v26 = vpop.trf.xlu0 }
 0x1b9   :  { %1224 = vst [vmem:[%s2235_s2 + $0x230] sm:$0xff] %v1223_v23  ;;  %v1255_v20 = vld [vmem:[#allocation2 + $0x2b0] sm:$0xff]  ;;  %750 = vst.msk [vmem:[#allocation2 + $0x240] sm:$0xff] %vm677_vm0, %v573_v26  ;;  %v605_v40 = vpop.trf.xlu1 }
 0x1ba   :  { %1256 = vst [vmem:[%s2235_s2 + $0x2b0] sm:$0xff] %v1255_v20  ;;  %766 = vst.msk [vmem:[#allocation2 + $0x2c0] sm:$0xff] %vm677_vm0, %v605_v40 }
 0x1bc   :  { %v1225_v42 = vld [vmem:[#allocation2 + $0x238] sm:$0xff]  ;;  %v574_v35 = vpop.trf.xlu0 }
 0x1bd   :  { %1226 = vst [vmem:[%s2235_s2 + $0x238] sm:$0xff] %v1225_v42  ;;  %v1257_v41 = vld [vmem:[#allocation2 + $0x2b8] sm:$0xff]  ;;  %751 = vst.msk [vmem:[#allocation2 + $0x248] sm:$0xff] %vm677_vm0, %v574_v35  ;;  %v606_v36 = vpop.trf.xlu1 }
 0x1be   :  { %1258 = vst [vmem:[%s2235_s2 + $0x2b8] sm:$0xff] %v1257_v41  ;;  %767 = vst.msk [vmem:[#allocation2 + $0x2c8] sm:$0xff] %vm677_vm0, %v606_v36 }
 0x1c0   :  { %v1227_v37 = vld [vmem:[#allocation2 + $0x240] sm:$0xff]  ;;  %v575_v3 = vpop.trf.xlu0 }
 0x1c1   :  { %1228 = vst [vmem:[%s2235_s2 + $0x240] sm:$0xff] %v1227_v37  ;;  %v1259_v21 = vld [vmem:[#allocation2 + $0x2c0] sm:$0xff]  ;;  %752 = vst.msk [vmem:[#allocation2 + $0x250] sm:$0xff] %vm677_vm0, %v575_v3  ;;  %v607_v24 = vpop.trf.xlu1 }
 0x1c2   :  { %1260 = vst [vmem:[%s2235_s2 + $0x2c0] sm:$0xff] %v1259_v21  ;;  %768 = vst.msk [vmem:[#allocation2 + $0x2d0] sm:$0xff] %vm677_vm0, %v607_v24 }
 0x1c4   :  { %v1229_v43 = vld [vmem:[#allocation2 + $0x248] sm:$0xff]  ;;  %v576_v44 = vpop.trf.xlu0 }
 0x1c5   :  { %1230 = vst [vmem:[%s2235_s2 + $0x248] sm:$0xff] %v1229_v43  ;;  %v1261_v4 = vld [vmem:[#allocation2 + $0x2c8] sm:$0xff]  ;;  %753 = vst.msk [vmem:[#allocation2 + $0x258] sm:$0xff] %vm677_vm0, %v576_v44  ;;  %v608_v45 = vpop.trf.xlu1 }
 0x1c6   :  { %1262 = vst [vmem:[%s2235_s2 + $0x2c8] sm:$0xff] %v1261_v4  ;;  %769 = vst.msk [vmem:[#allocation2 + $0x2d8] sm:$0xff] %vm677_vm0, %v608_v45 }
 0x1c8   :  { %v1231_v6 = vld [vmem:[#allocation2 + $0x250] sm:$0xff]  ;;  %v577_v48 = vpop.trf.xlu0 }
 0x1c9   :  { %1232 = vst [vmem:[%s2235_s2 + $0x250] sm:$0xff] %v1231_v6  ;;  %v1263_v29 = vld [vmem:[#allocation2 + $0x2d0] sm:$0xff]  ;;  %754 = vst.msk [vmem:[#allocation2 + $0x260] sm:$0xff] %vm677_vm0, %v577_v48  ;;  %v609_v38 = vpop.trf.xlu1 }
 0x1ca   :  { %1264 = vst [vmem:[%s2235_s2 + $0x2d0] sm:$0xff] %v1263_v29  ;;  %770 = vst.msk [vmem:[#allocation2 + $0x2e0] sm:$0xff] %vm677_vm0, %v609_v38 }
 0x1cc   :  { %v1233_v49 = vld [vmem:[#allocation2 + $0x258] sm:$0xff]  ;;  %v578_v30 = vpop.trf.xlu0 }
 0x1cd   :  { %1234 = vst [vmem:[%s2235_s2 + $0x258] sm:$0xff] %v1233_v49  ;;  %v1265_v14 = vld [vmem:[#allocation2 + $0x2d8] sm:$0xff]  ;;  %755 = vst.msk [vmem:[#allocation2 + $0x268] sm:$0xff] %vm677_vm0, %v578_v30  ;;  %v610_v7 = vpop.trf.xlu1 }
 0x1ce   :  { %1266 = vst [vmem:[%s2235_s2 + $0x2d8] sm:$0xff] %v1265_v14  ;;  %771 = vst.msk [vmem:[#allocation2 + $0x2e8] sm:$0xff] %vm677_vm0, %v610_v7 }
 0x1d0   :  { %v1235_v39 = vld [vmem:[#allocation2 + $0x260] sm:$0xff]  ;;  %v579_v50 = vpop.trf.xlu0 }
 0x1d1   :  { %1236 = vst [vmem:[%s2235_s2 + $0x260] sm:$0xff] %v1235_v39  ;;  %v1267_v57 = vld [vmem:[#allocation2 + $0x2e0] sm:$0xff]  ;;  %756 = vst.msk [vmem:[#allocation2 + $0x270] sm:$0xff] %vm677_vm0, %v579_v50  ;;  %v611_v31 = vpop.trf.xlu1 }
 0x1d2   :  { %1268 = vst [vmem:[%s2235_s2 + $0x2e0] sm:$0xff] %v1267_v57  ;;  %772 = vst.msk [vmem:[#allocation2 + $0x2f0] sm:$0xff] %vm677_vm0, %v611_v31 }
 0x1d4   :  { %v1237_v63 = vld [vmem:[#allocation2 + $0x268] sm:$0xff]  ;;  %v580_v53 = vpop.trf.xlu0 }
 0x1d5   :  { %1238 = vst [vmem:[%s2235_s2 + $0x268] sm:$0xff] %v1237_v63  ;;  %v1269_v54 = vld [vmem:[#allocation2 + $0x2e8] sm:$0xff]  ;;  %757 = vst.msk [vmem:[#allocation2 + $0x278] sm:$0xff] %vm677_vm0, %v580_v53  ;;  %v612_v17 = vpop.trf.xlu1 }
 0x1d6   :  { %1270 = vst [vmem:[%s2235_s2 + $0x2e8] sm:$0xff] %v1269_v54  ;;  %773 = vst.msk [vmem:[#allocation2 + $0x2f8] sm:$0xff] %vm677_vm0, %v612_v17 }
 0x1d8   :  { %v1239_v58 = vld [vmem:[#allocation2 + $0x270] sm:$0xff]  ;;  %v629_v32 = vpop.trf.xlu0 }
 0x1d9   :  { %1240 = vst [vmem:[%s2235_s2 + $0x270] sm:$0xff] %v1239_v58  ;;  %v1271_v2 = vld [vmem:[#allocation2 + $0x2f0] sm:$0xff]  ;;  %774 = vst.msk [vmem:[#allocation2 + $0x300] sm:$0xff] %vm677_vm0, %v629_v32  ;;  %v661_v59 = vpop.trf.xlu1 }
 0x1da   :  { %1272 = vst [vmem:[%s2235_s2 + $0x2f0] sm:$0xff] %v1271_v2  ;;  %790 = vst.msk [vmem:[#allocation2 + $0x380] sm:$0xff] %vm677_vm0, %v661_v59 }
 0x1dc   :  { %v1241_v47 = vld [vmem:[#allocation2 + $0x278] sm:$0xff]  ;;  %v630_v60 = vpop.trf.xlu0 }
 0x1dd   :  { %1242 = vst [vmem:[%s2235_s2 + $0x278] sm:$0xff] %v1241_v47  ;;  %v1273_v55 = vld [vmem:[#allocation2 + $0x2f8] sm:$0xff]  ;;  %775 = vst.msk [vmem:[#allocation2 + $0x308] sm:$0xff] %vm677_vm0, %v630_v60  ;;  %v662_v56 = vpop.trf.xlu1 }
 0x1de   :  { %1274 = vst [vmem:[%s2235_s2 + $0x2f8] sm:$0xff] %v1273_v55  ;;  %791 = vst.msk [vmem:[#allocation2 + $0x388] sm:$0xff] %vm677_vm0, %v662_v56 }
 0x1e0   :  { %v1275_v27 = vld [vmem:[#allocation2 + $0x300] sm:$0xff]  ;;  %v631_v61 = vpop.trf.xlu0 }
 0x1e1   :  { %1276 = vst [vmem:[%s2235_s2 + $0x300] sm:$0xff] %v1275_v27  ;;  %v1307_v33 = vld [vmem:[#allocation2 + $0x380] sm:$0xff]  ;;  %776 = vst.msk [vmem:[#allocation2 + $0x310] sm:$0xff] %vm677_vm0, %v631_v61  ;;  %v663_v28 = vpop.trf.xlu1 }
 0x1e2   :  { %1308 = vst [vmem:[%s2235_s2 + $0x380] sm:$0xff] %v1307_v33  ;;  %792 = vst.msk [vmem:[#allocation2 + $0x390] sm:$0xff] %vm677_vm0, %v663_v28 }
 0x1e4   :  { %v1277_v62 = vld [vmem:[#allocation2 + $0x308] sm:$0xff]  ;;  %v632_v0 = vpop.trf.xlu0 }
 0x1e5   :  { %1278 = vst [vmem:[%s2235_s2 + $0x308] sm:$0xff] %v1277_v62  ;;  %v1309_v1 = vld [vmem:[#allocation2 + $0x388] sm:$0xff]  ;;  %777 = vst.msk [vmem:[#allocation2 + $0x318] sm:$0xff] %vm677_vm0, %v632_v0  ;;  %v664_v5 = vpop.trf.xlu1 }
 0x1e6   :  { %1310 = vst [vmem:[%s2235_s2 + $0x388] sm:$0xff] %v1309_v1  ;;  %793 = vst.msk [vmem:[#allocation2 + $0x398] sm:$0xff] %vm677_vm0, %v664_v5 }
 0x1e8   :  { %v1279_v46 = vld [vmem:[#allocation2 + $0x310] sm:$0xff]  ;;  %v633_v34 = vpop.trf.xlu0 }
 0x1e9   :  { %1280 = vst [vmem:[%s2235_s2 + $0x310] sm:$0xff] %v1279_v46  ;;  %v1311_v51 = vld [vmem:[#allocation2 + $0x390] sm:$0xff]  ;;  %778 = vst.msk [vmem:[#allocation2 + $0x320] sm:$0xff] %vm677_vm0, %v633_v34  ;;  %v665_v52 = vpop.trf.xlu1 }
 0x1ea   :  { %1312 = vst [vmem:[%s2235_s2 + $0x390] sm:$0xff] %v1311_v51  ;;  %794 = vst.msk [vmem:[#allocation2 + $0x3a0] sm:$0xff] %vm677_vm0, %v665_v52 }
 0x1ec   :  { %v1281_v8 = vld [vmem:[#allocation2 + $0x318] sm:$0xff]  ;;  %v634_v9 = vpop.trf.xlu0 }
 0x1ed   :  { %1282 = vst [vmem:[%s2235_s2 + $0x318] sm:$0xff] %v1281_v8  ;;  %v1313_v18 = vld [vmem:[#allocation2 + $0x398] sm:$0xff]  ;;  %779 = vst.msk [vmem:[#allocation2 + $0x328] sm:$0xff] %vm677_vm0, %v634_v9  ;;  %v666_v10 = vpop.trf.xlu1 }
 0x1ee   :  { %1314 = vst [vmem:[%s2235_s2 + $0x398] sm:$0xff] %v1313_v18  ;;  %795 = vst.msk [vmem:[#allocation2 + $0x3a8] sm:$0xff] %vm677_vm0, %v666_v10 }
 0x1f0   :  { %v1283_v11 = vld [vmem:[#allocation2 + $0x320] sm:$0xff]  ;;  %v635_v12 = vpop.trf.xlu0 }
 0x1f1   :  { %1284 = vst [vmem:[%s2235_s2 + $0x320] sm:$0xff] %v1283_v11  ;;  %v1315_v13 = vld [vmem:[#allocation2 + $0x3a0] sm:$0xff]  ;;  %780 = vst.msk [vmem:[#allocation2 + $0x330] sm:$0xff] %vm677_vm0, %v635_v12  ;;  %v667_v19 = vpop.trf.xlu1 }
 0x1f2   :  { %1316 = vst [vmem:[%s2235_s2 + $0x3a0] sm:$0xff] %v1315_v13  ;;  %796 = vst.msk [vmem:[#allocation2 + $0x3b0] sm:$0xff] %vm677_vm0, %v667_v19 }
 0x1f4   :  { %v1285_v25 = vld [vmem:[#allocation2 + $0x328] sm:$0xff]  ;;  %v636_v15 = vpop.trf.xlu0 }
 0x1f5   :  { %1286 = vst [vmem:[%s2235_s2 + $0x328] sm:$0xff] %v1285_v25  ;;  %v1317_v16 = vld [vmem:[#allocation2 + $0x3a8] sm:$0xff]  ;;  %781 = vst.msk [vmem:[#allocation2 + $0x338] sm:$0xff] %vm677_vm0, %v636_v15  ;;  %v668_v22 = vpop.trf.xlu1 }
 0x1f6   :  { %1318 = vst [vmem:[%s2235_s2 + $0x3a8] sm:$0xff] %v1317_v16  ;;  %797 = vst.msk [vmem:[#allocation2 + $0x3b8] sm:$0xff] %vm677_vm0, %v668_v22 }
 0x1f8   :  { %v1287_v23 = vld [vmem:[#allocation2 + $0x330] sm:$0xff]  ;;  %v637_v26 = vpop.trf.xlu0 }
 0x1f9   :  { %1288 = vst [vmem:[%s2235_s2 + $0x330] sm:$0xff] %v1287_v23  ;;  %v1319_v20 = vld [vmem:[#allocation2 + $0x3b0] sm:$0xff]  ;;  %782 = vst.msk [vmem:[#allocation2 + $0x340] sm:$0xff] %vm677_vm0, %v637_v26  ;;  %v669_v40 = vpop.trf.xlu1 }
 0x1fa   :  { %1320 = vst [vmem:[%s2235_s2 + $0x3b0] sm:$0xff] %v1319_v20  ;;  %798 = vst.msk [vmem:[#allocation2 + $0x3c0] sm:$0xff] %vm677_vm0, %v669_v40 }
 0x1fc   :  { %v1289_v42 = vld [vmem:[#allocation2 + $0x338] sm:$0xff]  ;;  %v638_v35 = vpop.trf.xlu0 }
 0x1fd   :  { %1290 = vst [vmem:[%s2235_s2 + $0x338] sm:$0xff] %v1289_v42  ;;  %v1321_v41 = vld [vmem:[#allocation2 + $0x3b8] sm:$0xff]  ;;  %783 = vst.msk [vmem:[#allocation2 + $0x348] sm:$0xff] %vm677_vm0, %v638_v35  ;;  %v670_v36 = vpop.trf.xlu1 }
 0x1fe   :  { %1322 = vst [vmem:[%s2235_s2 + $0x3b8] sm:$0xff] %v1321_v41  ;;  %799 = vst.msk [vmem:[#allocation2 + $0x3c8] sm:$0xff] %vm677_vm0, %v670_v36 }
 0x200   :  { %v1291_v37 = vld [vmem:[#allocation2 + $0x340] sm:$0xff]  ;;  %v639_v3 = vpop.trf.xlu0 }
 0x201   :  { %1292 = vst [vmem:[%s2235_s2 + $0x340] sm:$0xff] %v1291_v37  ;;  %v1323_v21 = vld [vmem:[#allocation2 + $0x3c0] sm:$0xff]  ;;  %784 = vst.msk [vmem:[#allocation2 + $0x350] sm:$0xff] %vm677_vm0, %v639_v3  ;;  %v671_v24 = vpop.trf.xlu1 }
 0x202   :  { %1324 = vst [vmem:[%s2235_s2 + $0x3c0] sm:$0xff] %v1323_v21  ;;  %800 = vst.msk [vmem:[#allocation2 + $0x3d0] sm:$0xff] %vm677_vm0, %v671_v24 }
 0x204   :  { %v1293_v43 = vld [vmem:[#allocation2 + $0x348] sm:$0xff]  ;;  %v640_v44 = vpop.trf.xlu0 }
 0x205   :  { %1294 = vst [vmem:[%s2235_s2 + $0x348] sm:$0xff] %v1293_v43  ;;  %v1325_v4 = vld [vmem:[#allocation2 + $0x3c8] sm:$0xff]  ;;  %785 = vst.msk [vmem:[#allocation2 + $0x358] sm:$0xff] %vm677_vm0, %v640_v44  ;;  %v672_v45 = vpop.trf.xlu1 }
 0x206   :  { %1326 = vst [vmem:[%s2235_s2 + $0x3c8] sm:$0xff] %v1325_v4  ;;  %801 = vst.msk [vmem:[#allocation2 + $0x3d8] sm:$0xff] %vm677_vm0, %v672_v45 }
 0x208   :  { %v1295_v6 = vld [vmem:[#allocation2 + $0x350] sm:$0xff]  ;;  %v641_v48 = vpop.trf.xlu0 }
 0x209   :  { %1296 = vst [vmem:[%s2235_s2 + $0x350] sm:$0xff] %v1295_v6  ;;  %v1327_v29 = vld [vmem:[#allocation2 + $0x3d0] sm:$0xff]  ;;  %786 = vst.msk [vmem:[#allocation2 + $0x360] sm:$0xff] %vm677_vm0, %v641_v48  ;;  %v673_v38 = vpop.trf.xlu1 }
 0x20a   :  { %1328 = vst [vmem:[%s2235_s2 + $0x3d0] sm:$0xff] %v1327_v29  ;;  %802 = vst.msk [vmem:[#allocation2 + $0x3e0] sm:$0xff] %vm677_vm0, %v673_v38 }
 0x20c   :  { %v1297_v49 = vld [vmem:[#allocation2 + $0x358] sm:$0xff]  ;;  %v642_v30 = vpop.trf.xlu0 }
 0x20d   :  { %1298 = vst [vmem:[%s2235_s2 + $0x358] sm:$0xff] %v1297_v49  ;;  %v1329_v14 = vld [vmem:[#allocation2 + $0x3d8] sm:$0xff]  ;;  %787 = vst.msk [vmem:[#allocation2 + $0x368] sm:$0xff] %vm677_vm0, %v642_v30  ;;  %v674_v7 = vpop.trf.xlu1 }
 0x20e   :  { %1330 = vst [vmem:[%s2235_s2 + $0x3d8] sm:$0xff] %v1329_v14 }
 0x210   :  { %v1299_v39 = vld [vmem:[#allocation2 + $0x360] sm:$0xff]  ;;  %v643_v50 = vpop.trf.xlu0 }
 0x211   :  { %1300 = vst [vmem:[%s2235_s2 + $0x360] sm:$0xff] %v1299_v39  ;;  %v1331_v57 = vld [vmem:[#allocation2 + $0x3e0] sm:$0xff]  ;;  %788 = vst.msk [vmem:[#allocation2 + $0x370] sm:$0xff] %vm677_vm0, %v643_v50  ;;  %v675_v31 = vpop.trf.xlu1 }
 0x212   :  { %1332 = vst [vmem:[%s2235_s2 + $0x3e0] sm:$0xff] %v1331_v57 }
 0x214   :  { %v1301_v63 = vld [vmem:[#allocation2 + $0x368] sm:$0xff]  ;;  %v644_v53 = vpop.trf.xlu0 }
 0x215   :  { %1302 = vst [vmem:[%s2235_s2 + $0x368] sm:$0xff] %v1301_v63  ;;  %789 = vst.msk [vmem:[#allocation2 + $0x378] sm:$0xff] %vm677_vm0, %v644_v53  ;;  %v676_v54 = vpop.trf.xlu1 }
 0x218   :  { %v1303_v17 = vld [vmem:[#allocation2 + $0x370] sm:$0xff] }
 0x219   :  { %1304 = vst [vmem:[%s2235_s2 + $0x370] sm:$0xff] %v1303_v17 }
 0x21c   :  { %v1305_v58 = vld [vmem:[#allocation2 + $0x378] sm:$0xff] }
 0x21d   :  { %1306 = vst [vmem:[%s2235_s2 + $0x378] sm:$0xff] %v1305_v58 }

</bundles_post_ra>
